<compile_context>
chip_gen: v7x
topology: tpu7x:2x2x1
jax: 0.10.0
libtpu: 0.0.40
codegen_flags: <defaults>
</compile_context>

<pallas_src>
import functools

import jax
import jax.numpy as jnp
from jax.experimental import pallas as pl
from jax.experimental.pallas import tpu as pltpu


# ----------------------------- small helpers -------------------------------

def _round_up(n, m):
    return ((n + m - 1) // m) * m


def _layer_norm(x, gamma, beta, eps=1e-5):
    mu = jnp.mean(x, axis=-1, keepdims=True)
    var = jnp.mean((x - mu) ** 2, axis=-1, keepdims=True)
    return (x - mu) * jax.lax.rsqrt(var + eps) * gamma + beta


def _bf16(x):
    return x.astype(jnp.bfloat16)


def _vmem_limit_bytes():
    """Generation-aware VMEM limit, leaving headroom for compiler scratch."""
    try:
        cap = int(pltpu.get_tpu_info().vmem_capacity_bytes)
    except Exception:
        cap = 64 * 1024 * 1024          # conservative (v7x-sized) fallback
    return max(32 * 1024 * 1024, cap - 16 * 1024 * 1024)


# Row layout of the packed (9, D) bias / LayerNorm operand.
_BQ, _BK, _BV, _BO, _LN1G, _LN1B, _LN2G, _LN2B, _FC2B = range(9)


# ------------------------------- the kernel --------------------------------

def _encoder_layer_kernel(num_heads, seq_len,
                          xq_ref, xkv_ref,
                          wq_ref, wk_ref, wv_ref, wo_ref,
                          fc1_w_ref, fc2_w_ref, vec_ref, fc1_b_ref,
                          o_ref,
                          k_cache, v_cache):
    t = pl.program_id(1)

    vecs = vec_ref[...]                          # (9, D) f32 packed vectors
    bq = vecs[_BQ:_BQ + 1, :]
    bk = vecs[_BK:_BK + 1, :]
    bv = vecs[_BV:_BV + 1, :]
    bo = vecs[_BO:_BO + 1, :]
    ln1_g = vecs[_LN1G:_LN1G + 1, :]
    ln1_b = vecs[_LN1B:_LN1B + 1, :]
    ln2_g = vecs[_LN2G:_LN2G + 1, :]
    ln2_b = vecs[_LN2B:_LN2B + 1, :]
    fc2_b = vecs[_FC2B:_FC2B + 1, :]
    fc1_b = fc1_b_ref[...]                       # (1, F) f32

    # --- K/V projections: once per batch element (t == 0), cached in VMEM ---
    # The seq-tile grid axis is "arbitrary", so later tiles of the same batch
    # element reuse the cache instead of redoing the two S*D^2 matmuls.
    @pl.when(t == 0)
    def _():
        xkv = xkv_ref[...]                       # (S_pad, D) bf16 full sequence
        k = jnp.dot(xkv, wk_ref[...], preferred_element_type=jnp.float32) + bk
        v = jnp.dot(xkv, wv_ref[...], preferred_element_type=jnp.float32) + bv
        k_cache[...] = k.astype(jnp.bfloat16)
        v_cache[...] = v.astype(jnp.bfloat16)

    xq = xq_ref[...]                             # (TQ, D) f32 query-tile rows
    # 1/sqrt(head_dim) scaling already folded into Wq / bq host-side.
    q = jnp.dot(_bf16(xq), wq_ref[...], preferred_element_type=jnp.float32) + bq

    k = k_cache[...]                             # (S_pad, D) bf16
    v = v_cache[...]
    D = q.shape[-1]
    hd = D // num_heads
    s_pad = k.shape[0]

    # TODO(synk): for very long sequences, tile the keys with an online
    # (flash-style) softmax instead of materializing the (TQ, S) scores.
    ctx_heads = []
    for h in range(num_heads):                   # static unroll, 2-D matmuls
        sl = slice(h * hd, (h + 1) * hd)
        scores = jax.lax.dot_general(            # q @ k^T, no explicit transpose
            _bf16(q[:, sl]), k[:, sl],
            dimension_numbers=(((1,), (1,)), ((), ())),
            preferred_element_type=jnp.float32)                    # (TQ, S_pad)
        if s_pad != seq_len:                     # static: only if seq was padded
            kmask = jax.lax.broadcasted_iota(jnp.int32, (1, s_pad), 1) < seq_len
            scores = jnp.where(kmask, scores, -1e30)
        scores = scores - jnp.max(scores, axis=-1, keepdims=True)
        e = jnp.exp(scores)
        p = e * pl.reciprocal(jnp.sum(e, axis=-1, keepdims=True), approx=True)
        ctx_heads.append(jnp.dot(_bf16(p), v[:, sl],
                                 preferred_element_type=jnp.float32))  # (TQ, hd)

    # Concatenate heads and run the output projection as ONE full-depth matmul
    # (better MXU utilization than H shallow K=head_dim matmuls).
    ctx = _bf16(jnp.concatenate(ctx_heads, axis=-1))                   # (TQ, D)
    attn = jnp.dot(ctx, wo_ref[...], preferred_element_type=jnp.float32) + bo

    # --- residual + post-norm (normalize_before=False) ---
    x = _layer_norm(xq + attn, ln1_g, ln1_b)

    # --- FFN: fc1 -> relu -> fc2 -> residual -> post-norm ---
    h1 = jnp.dot(_bf16(x), fc1_w_ref[...], preferred_element_type=jnp.float32) + fc1_b
    h1 = jnp.maximum(h1, 0.0)
    h2 = jnp.dot(_bf16(h1), fc2_w_ref[...], preferred_element_type=jnp.float32) + fc2_b
    x = _layer_norm(x + h2, ln2_g, ln2_b)

    o_ref[...] = x.astype(o_ref.dtype)


# ------------------------------- the wrapper --------------------------------

def transformer_encoder_layer(x_sbd, params, num_heads,
                              encoder_padding_mask=None, q_tile=128):
    """x_sbd: (seq_len, batch, embed_dim) -> (seq_len, batch, embed_dim)."""
    # TODO(synk): encoder_padding_mask / attn_mask are not modeled (None path);
    # dropout is a no-op at inference.
    S, B, D = x_sbd.shape
    hd = D // num_heads
    scaling = float(hd) ** -0.5

    # Query tile over the sequence; pad S up to a multiple of the tile so the
    # pipeline keeps depth (tq never silently collapses to the whole sequence).
    tq = min(q_tile, _round_up(S, 8))
    s_pad = _round_up(S, tq)
    n_tiles = s_pad // tq

    x = x_sbd.astype(jnp.float32)
    if s_pad != S:
        x = jnp.pad(x, ((0, s_pad - S), (0, 0), (0, 0)))
    # (S, B, D) -> (B, S, D) so batch is the leading ("parallel") grid axis.
    # TODO(synk): both host transposes could be dropped with batch-squeezed
    # BlockSpecs on the original (S, B, D) layout; kept for robustness here.
    x_q = jnp.transpose(x, (1, 0, 2))            # f32: residual / LayerNorm path
    x_kv = x_q.astype(jnp.bfloat16)              # bf16: only feeds K/V matmuls

    # Matmul weights in bf16 (MXU-native, halves resident VMEM); all small
    # bias / LayerNorm vectors packed into a single (9, D) f32 operand.
    consts = [
        _bf16(params["Wq"] * scaling),           # query scaling folded in
        _bf16(params["Wk"]),
        _bf16(params["Wv"]),
        _bf16(params["Wo"]),
        _bf16(params["fc1_w"]),
        _bf16(params["fc2_w"]),
        jnp.concatenate(
            [params["bq"] * scaling, params["bk"], params["bv"], params["bo"],
             params["ln1_g"], params["ln1_b"], params["ln2_g"], params["ln2_b"],
             params["fc2_b"]], axis=0).astype(jnp.float32),        # (9, D)
        params["fc1_b"].astype(jnp.float32),                        # (1, F)
    ]

    kernel = functools.partial(_encoder_layer_kernel, num_heads, S)

    def build(single_buffer_consts):
        # Constant operands (index map never changes): single-buffer them so
        # the weight set is resident once, not twice (matters for v7x VMEM).
        const_kw = (dict(pipeline_mode=pl.Buffered(1))
                    if single_buffer_consts else {})

        def const_spec(p):
            return pl.BlockSpec(p.shape, lambda b, t: (0, 0), **const_kw)

        in_specs = (
            [pl.BlockSpec((None, tq, D), lambda b, t: (b, t, 0)),      # query tile
             pl.BlockSpec((None, s_pad, D), lambda b, t: (b, 0, 0))]   # full seq (K/V src)
            + [const_spec(p) for p in consts])
        out_specs = pl.BlockSpec((None, tq, D), lambda b, t: (b, t, 0))

        return pl.pallas_call(
            kernel,
            grid=(B, n_tiles),
            in_specs=in_specs,
            out_specs=out_specs,
            out_shape=jax.ShapeDtypeStruct((B, s_pad, D), jnp.float32),
            scratch_shapes=[pltpu.VMEM((s_pad, D), jnp.bfloat16),    # K cache
                            pltpu.VMEM((s_pad, D), jnp.bfloat16)],   # V cache
            compiler_params=pltpu.CompilerParams(
                # batch stays "parallel" (v7x 2-TC split); the seq-tile axis
                # must be "arbitrary" so the per-batch K/V cache written at
                # t == 0 is valid for all later tiles of that batch element.
                dimension_semantics=("parallel", "arbitrary"),
                vmem_limit_bytes=_vmem_limit_bytes()),
        )

    try:
        y = build(True)(x_q, x_kv, *consts)
    except Exception:
        # TODO(synk): pl.Buffered(1) single-buffering of constant operands is
        # not supported by this jax version; fall back to default buffering.
        y = build(False)(x_q, x_kv, *consts)

    y = jnp.transpose(y, (1, 0, 2))
    if s_pad != S:
        y = y[:S]
    return y


# ------------------------- pure-JAX reference (f32) --------------------------

def _reference_forward(x_sbd, params, num_heads):
    D = x_sbd.shape[-1]
    hd = D // num_heads
    scaling = float(hd) ** -0.5
    x = x_sbd.astype(jnp.float32)
    S, B, _ = x.shape

    def ln(v, g, b, eps=1e-5):
        mu = jnp.mean(v, -1, keepdims=True)
        var = jnp.mean((v - mu) ** 2, -1, keepdims=True)
        return (v - mu) / jnp.sqrt(var + eps) * g + b

    residual = x
    q = (jnp.einsum("sbd,de->sbe", x, params["Wq"]) + params["bq"]) * scaling
    k = jnp.einsum("sbd,de->sbe", x, params["Wk"]) + params["bk"]
    v = jnp.einsum("sbd,de->sbe", x, params["Wv"]) + params["bv"]
    q = q.reshape(S, B, num_heads, hd)
    k = k.reshape(S, B, num_heads, hd)
    v = v.reshape(S, B, num_heads, hd)
    scores = jnp.einsum("qbhd,kbhd->bhqk", q, k)
    p = jax.nn.softmax(scores, axis=-1)
    ctx = jnp.einsum("bhqk,kbhd->qbhd", p, v).reshape(S, B, D)
    attn = jnp.einsum("sbd,de->sbe", ctx, params["Wo"]) + params["bo"]
    x = ln(residual + attn, params["ln1_g"], params["ln1_b"])
    residual = x
    h = jax.nn.relu(jnp.einsum("sbd,df->sbf", x, params["fc1_w"]) + params["fc1_b"])
    h = jnp.einsum("sbf,fd->sbd", h, params["fc2_w"]) + params["fc2_b"]
    return ln(residual + h, params["ln2_g"], params["ln2_b"])


# --------------------------- deterministic init ------------------------------

def _xavier_uniform(key, fan_in, fan_out, gain=1.0):
    limit = gain * (6.0 / (fan_in + fan_out)) ** 0.5
    return jax.random.uniform(key, (fan_in, fan_out), jnp.float32, -limit, limit)


def init_params(key, embed_dim, ffn_dim):
    D, F = embed_dim, ffn_dim
    keys = jax.random.split(key, 6)
    gain_qkv = 1.0 / (2.0 ** 0.5)  # fairseq MHA init when q/k/v dims are equal
    return {
        # projections stored (in, out); y = x @ W + b
        "Wq": _xavier_uniform(keys[0], D, D, gain_qkv),
        "Wk": _xavier_uniform(keys[1], D, D, gain_qkv),
        "Wv": _xavier_uniform(keys[2], D, D, gain_qkv),
        "Wo": _xavier_uniform(keys[3], D, D),
        "bq": jnp.zeros((1, D), jnp.float32),
        "bk": jnp.zeros((1, D), jnp.float32),
        "bv": jnp.zeros((1, D), jnp.float32),
        "bo": jnp.zeros((1, D), jnp.float32),
        "ln1_g": jnp.ones((1, D), jnp.float32),
        "ln1_b": jnp.zeros((1, D), jnp.float32),
        "fc1_w": _xavier_uniform(keys[4], D, F),
        "fc1_b": jnp.zeros((1, F), jnp.float32),
        "fc2_w": _xavier_uniform(keys[5], F, D),
        "fc2_b": jnp.zeros((1, D), jnp.float32),
        "ln2_g": jnp.ones((1, D), jnp.float32),
        "ln2_b": jnp.zeros((1, D), jnp.float32),
    }


# ----------------------------------- main ------------------------------------

if __name__ == "__main__":
    # fairseq layout: x is (seq_len, batch, embed_dim).
    SEQ, BATCH, EMBED, HEADS, FFN = 8, 2, 32, 4, 64

    key = jax.random.PRNGKey(0)
    k_x, k_params = jax.random.split(key)

    x = jax.random.normal(k_x, (SEQ, BATCH, EMBED), jnp.float32)
    params = init_params(k_params, EMBED, FFN)

    out = transformer_encoder_layer(x, params, HEADS)
    out = jax.block_until_ready(out)
    assert out.shape == (SEQ, BATCH, EMBED)

    # Sanity check vs f32 reference (kernel matmuls run in bf16 and the softmax
    # denominator uses the approximate EUP reciprocal); tolerance tightened
    # from the previous 0.3 to 0.1 absolute.
    ref = _reference_forward(x, params, HEADS)
    max_err = float(jnp.max(jnp.abs(out - ref)))
    assert max_err < 0.1, f"mismatch vs reference: max abs err = {max_err}"

    print("KERNEL_OK")
</pallas_src>

<mosaic_0001>
module attributes {stable_mosaic.version = 11 : i64} {
  func.func @_encoder_layer_kernel(%arg0: i32, %arg1: i32, %arg2: memref<1x8x32xf32, #tpu.memory_space<vmem>>, %arg3: memref<1x8x32xbf16, #tpu.memory_space<vmem>>, %arg4: memref<32x32xbf16, #tpu.memory_space<vmem>>, %arg5: memref<32x32xbf16, #tpu.memory_space<vmem>>, %arg6: memref<32x32xbf16, #tpu.memory_space<vmem>>, %arg7: memref<32x32xbf16, #tpu.memory_space<vmem>>, %arg8: memref<32x64xbf16, #tpu.memory_space<vmem>>, %arg9: memref<64x32xbf16, #tpu.memory_space<vmem>>, %arg10: memref<9x32xf32, #tpu.memory_space<vmem>>, %arg11: memref<1x64xf32, #tpu.memory_space<vmem>>, %arg12: memref<1x8x32xf32, #tpu.memory_space<vmem>>, %arg13: memref<8x32xbf16, #tpu.memory_space<vmem>>, %arg14: memref<8x32xbf16, #tpu.memory_space<vmem>>) attributes {dimension_semantics = [#tpu.dimension_semantics<parallel>, #tpu.dimension_semantics<arbitrary>], iteration_bounds = array<i64: 2, 1>, scalar_prefetch = 0 : i64, scratch_operands = 2 : i64, tpu.core_type = #tpu.core_type<tc>, window_params = [{transform_indices = @transform_0, window_bounds = array<i64: 1, 8, 32>}, {transform_indices = @transform_1, window_bounds = array<i64: 1, 8, 32>}, {pipeline_mode = #tpu.pipeline_mode<synchronous>, transform_indices = @transform_2, window_bounds = array<i64: 32, 32>}, {pipeline_mode = #tpu.pipeline_mode<synchronous>, transform_indices = @transform_3, window_bounds = array<i64: 32, 32>}, {pipeline_mode = #tpu.pipeline_mode<synchronous>, transform_indices = @transform_4, window_bounds = array<i64: 32, 32>}, {pipeline_mode = #tpu.pipeline_mode<synchronous>, transform_indices = @transform_5, window_bounds = array<i64: 32, 32>}, {pipeline_mode = #tpu.pipeline_mode<synchronous>, transform_indices = @transform_6, window_bounds = array<i64: 32, 64>}, {pipeline_mode = #tpu.pipeline_mode<synchronous>, transform_indices = @transform_7, window_bounds = array<i64: 64, 32>}, {pipeline_mode = #tpu.pipeline_mode<synchronous>, transform_indices = @transform_8, window_bounds = array<i64: 9, 32>}, {pipeline_mode = #tpu.pipeline_mode<synchronous>, transform_indices = @transform_9, window_bounds = array<i64: 1, 64>}, {transform_indices = @transform_10, window_bounds = array<i64: 1, 8, 32>}]} {
    %c0 = arith.constant 0 : index
    %c0_0 = arith.constant 0 : index
    %0 = vector.load %arg10[%c0, %c0_0] : memref<9x32xf32, #tpu.memory_space<vmem>>, vector<9x32xf32>
    %1 = vector.extract_strided_slice %0 {offsets = [0, 0], sizes = [1, 32], strides = [1, 1]} : vector<9x32xf32> to vector<1x32xf32>
    %2 = vector.extract_strided_slice %0 {offsets = [1, 0], sizes = [1, 32], strides = [1, 1]} : vector<9x32xf32> to vector<1x32xf32>
    %3 = vector.extract_strided_slice %0 {offsets = [2, 0], sizes = [1, 32], strides = [1, 1]} : vector<9x32xf32> to vector<1x32xf32>
    %4 = vector.extract_strided_slice %0 {offsets = [3, 0], sizes = [1, 32], strides = [1, 1]} : vector<9x32xf32> to vector<1x32xf32>
    %5 = vector.extract_strided_slice %0 {offsets = [4, 0], sizes = [1, 32], strides = [1, 1]} : vector<9x32xf32> to vector<1x32xf32>
    %6 = vector.extract_strided_slice %0 {offsets = [5, 0], sizes = [1, 32], strides = [1, 1]} : vector<9x32xf32> to vector<1x32xf32>
    %7 = vector.extract_strided_slice %0 {offsets = [6, 0], sizes = [1, 32], strides = [1, 1]} : vector<9x32xf32> to vector<1x32xf32>
    %8 = vector.extract_strided_slice %0 {offsets = [7, 0], sizes = [1, 32], strides = [1, 1]} : vector<9x32xf32> to vector<1x32xf32>
    %9 = vector.extract_strided_slice %0 {offsets = [8, 0], sizes = [1, 32], strides = [1, 1]} : vector<9x32xf32> to vector<1x32xf32>
    %c0_1 = arith.constant 0 : index
    %c0_2 = arith.constant 0 : index
    %10 = vector.load %arg11[%c0_1, %c0_2] : memref<1x64xf32, #tpu.memory_space<vmem>>, vector<1x64xf32>
    %c0_i32 = arith.constant 0 : i32
    %11 = arith.cmpi eq, %arg1, %c0_i32 : i32
    %12 = arith.extui %11 : i1 to i32
    %c0_i32_3 = arith.constant 0 : i32
    %13 = arith.cmpi ne, %12, %c0_i32_3 : i32
    scf.if %13 {
      %c0_52 = arith.constant 0 : index
      %c0_53 = arith.constant 0 : index
      %c0_54 = arith.constant 0 : index
      %158 = vector.load %arg3[%c0_52, %c0_53, %c0_54] : memref<1x8x32xbf16, #tpu.memory_space<vmem>>, vector<1x8x32xbf16>
      %159 = vector.shape_cast %158 : vector<1x8x32xbf16> to vector<8x32xbf16>
      %c0_55 = arith.constant 0 : index
      %c0_56 = arith.constant 0 : index
      %160 = vector.load %arg5[%c0_55, %c0_56] : memref<32x32xbf16, #tpu.memory_space<vmem>>, vector<32x32xbf16>
      %cst_57 = arith.constant dense<0.000000e+00> : vector<8x32xf32>
      %161 = tpu.matmul %159, %160, %cst_57 {dimension_numbers = #tpu.dot_dimension_numbers<[1], [0], [0], [1], [0, 0, 1, 1], [], []>} : vector<8x32xbf16>, vector<32x32xbf16>, vector<8x32xf32> -> vector<8x32xf32>
      %162 = vector.broadcast %2 : vector<1x32xf32> to vector<8x32xf32>
      %163 = arith.addf %161, %162 : vector<8x32xf32>
      %c0_58 = arith.constant 0 : index
      %c0_59 = arith.constant 0 : index
      %164 = vector.load %arg6[%c0_58, %c0_59] : memref<32x32xbf16, #tpu.memory_space<vmem>>, vector<32x32xbf16>
      %cst_60 = arith.constant dense<0.000000e+00> : vector<8x32xf32>
      %165 = tpu.matmul %159, %164, %cst_60 {dimension_numbers = #tpu.dot_dimension_numbers<[1], [0], [0], [1], [0, 0, 1, 1], [], []>} : vector<8x32xbf16>, vector<32x32xbf16>, vector<8x32xf32> -> vector<8x32xf32>
      %166 = vector.broadcast %3 : vector<1x32xf32> to vector<8x32xf32>
      %167 = arith.addf %165, %166 : vector<8x32xf32>
      %168 = arith.truncf %163 : vector<8x32xf32> to vector<8x32xbf16>
      %c0_61 = arith.constant 0 : index
      %c0_62 = arith.constant 0 : index
      %169 = vector.load %arg13[%c0_61, %c0_62] : memref<8x32xbf16, #tpu.memory_space<vmem>>, vector<8x32xbf16>
      tpu.vector_store %arg13[%c0_61, %c0_62], %168 {strides = array<i32>} : memref<8x32xbf16, #tpu.memory_space<vmem>>, vector<8x32xbf16>,
      %170 = arith.truncf %167 : vector<8x32xf32> to vector<8x32xbf16>
      %c0_63 = arith.constant 0 : index
      %c0_64 = arith.constant 0 : index
      %171 = vector.load %arg14[%c0_63, %c0_64] : memref<8x32xbf16, #tpu.memory_space<vmem>>, vector<8x32xbf16>
      tpu.vector_store %arg14[%c0_63, %c0_64], %170 {strides = array<i32>} : memref<8x32xbf16, #tpu.memory_space<vmem>>, vector<8x32xbf16>,
    } else {
    }
    %c0_4 = arith.constant 0 : index
    %c0_5 = arith.constant 0 : index
    %c0_6 = arith.constant 0 : index
    %14 = vector.load %arg2[%c0_4, %c0_5, %c0_6] : memref<1x8x32xf32, #tpu.memory_space<vmem>>, vector<1x8x32xf32>
    %15 = vector.shape_cast %14 : vector<1x8x32xf32> to vector<8x32xf32>
    %16 = arith.truncf %15 : vector<8x32xf32> to vector<8x32xbf16>
    %c0_7 = arith.constant 0 : index
    %c0_8 = arith.constant 0 : index
    %17 = vector.load %arg4[%c0_7, %c0_8] : memref<32x32xbf16, #tpu.memory_space<vmem>>, vector<32x32xbf16>
    %cst = arith.constant dense<0.000000e+00> : vector<8x32xf32>
    %18 = tpu.matmul %16, %17, %cst {dimension_numbers = #tpu.dot_dimension_numbers<[1], [0], [0], [1], [0, 0, 1, 1], [], []>} : vector<8x32xbf16>, vector<32x32xbf16>, vector<8x32xf32> -> vector<8x32xf32>
    %19 = vector.broadcast %1 : vector<1x32xf32> to vector<8x32xf32>
    %20 = arith.addf %18, %19 : vector<8x32xf32>
    %c0_9 = arith.constant 0 : index
    %c0_10 = arith.constant 0 : index
    %21 = vector.load %arg13[%c0_9, %c0_10] : memref<8x32xbf16, #tpu.memory_space<vmem>>, vector<8x32xbf16>
    %c0_11 = arith.constant 0 : index
    %c0_12 = arith.constant 0 : index
    %22 = vector.load %arg14[%c0_11, %c0_12] : memref<8x32xbf16, #tpu.memory_space<vmem>>, vector<8x32xbf16>
    %23 = vector.extract_strided_slice %20 {offsets = [0, 0], sizes = [8, 8], strides = [1, 1]} : vector<8x32xf32> to vector<8x8xf32>
    %24 = arith.truncf %23 : vector<8x8xf32> to vector<8x8xbf16>
    %25 = vector.extract_strided_slice %21 {offsets = [0, 0], sizes = [8, 8], strides = [1, 1]} : vector<8x32xbf16> to vector<8x8xbf16>
    %cst_13 = arith.constant dense<0.000000e+00> : vector<8x8xf32>
    %26 = tpu.matmul %24, %25, %cst_13 {dimension_numbers = #tpu.dot_dimension_numbers<[1], [1], [0], [0], [0, 0, 1, 0], [], []>} : vector<8x8xbf16>, vector<8x8xbf16>, vector<8x8xf32> -> vector<8x8xf32>
    %cst_14 = arith.constant dense<0xFF800000> : vector<8xf32>
    %27 = vector.multi_reduction <maximumf>, %26, %cst_14 [1] : vector<8x8xf32> to vector<8xf32>
    %28 = vector.shape_cast %27 : vector<8xf32> to vector<8x1xf32>
    %29 = vector.broadcast %28 : vector<8x1xf32> to vector<8x8xf32>
    %30 = arith.subf %26, %29 : vector<8x8xf32>
    %31 = math.exp %30 : vector<8x8xf32>
    %cst_15 = arith.constant dense<0.000000e+00> : vector<8xf32>
    %32 = vector.multi_reduction <add>, %31, %cst_15 [1] : vector<8x8xf32> to vector<8xf32>
    %33 = vector.shape_cast %32 : vector<8xf32> to vector<8x1xf32>
    %34 = tpu.reciprocal %33 {approx = true} : vector<8x1xf32> -> vector<8x1xf32>
    %35 = vector.broadcast %34 : vector<8x1xf32> to vector<8x8xf32>
    %36 = arith.mulf %31, %35 : vector<8x8xf32>
    %37 = arith.truncf %36 : vector<8x8xf32> to vector<8x8xbf16>
    %38 = vector.extract_strided_slice %22 {offsets = [0, 0], sizes = [8, 8], strides = [1, 1]} : vector<8x32xbf16> to vector<8x8xbf16>
    %cst_16 = arith.constant dense<0.000000e+00> : vector<8x8xf32>
    %39 = tpu.matmul %37, %38, %cst_16 {dimension_numbers = #tpu.dot_dimension_numbers<[1], [0], [0], [1], [0, 0, 1, 1], [], []>} : vector<8x8xbf16>, vector<8x8xbf16>, vector<8x8xf32> -> vector<8x8xf32>
    %40 = vector.extract_strided_slice %20 {offsets = [0, 8], sizes = [8, 8], strides = [1, 1]} : vector<8x32xf32> to vector<8x8xf32>
    %41 = arith.truncf %40 : vector<8x8xf32> to vector<8x8xbf16>
    %42 = vector.extract_strided_slice %21 {offsets = [0, 8], sizes = [8, 8], strides = [1, 1]} : vector<8x32xbf16> to vector<8x8xbf16>
    %cst_17 = arith.constant dense<0.000000e+00> : vector<8x8xf32>
    %43 = tpu.matmul %41, %42, %cst_17 {dimension_numbers = #tpu.dot_dimension_numbers<[1], [1], [0], [0], [0, 0, 1, 0], [], []>} : vector<8x8xbf16>, vector<8x8xbf16>, vector<8x8xf32> -> vector<8x8xf32>
    %cst_18 = arith.constant dense<0xFF800000> : vector<8xf32>
    %44 = vector.multi_reduction <maximumf>, %43, %cst_18 [1] : vector<8x8xf32> to vector<8xf32>
    %45 = vector.shape_cast %44 : vector<8xf32> to vector<8x1xf32>
    %46 = vector.broadcast %45 : vector<8x1xf32> to vector<8x8xf32>
    %47 = arith.subf %43, %46 : vector<8x8xf32>
    %48 = math.exp %47 : vector<8x8xf32>
    %cst_19 = arith.constant dense<0.000000e+00> : vector<8xf32>
    %49 = vector.multi_reduction <add>, %48, %cst_19 [1] : vector<8x8xf32> to vector<8xf32>
    %50 = vector.shape_cast %49 : vector<8xf32> to vector<8x1xf32>
    %51 = tpu.reciprocal %50 {approx = true} : vector<8x1xf32> -> vector<8x1xf32>
    %52 = vector.broadcast %51 : vector<8x1xf32> to vector<8x8xf32>
    %53 = arith.mulf %48, %52 : vector<8x8xf32>
    %54 = arith.truncf %53 : vector<8x8xf32> to vector<8x8xbf16>
    %55 = vector.extract_strided_slice %22 {offsets = [0, 8], sizes = [8, 8], strides = [1, 1]} : vector<8x32xbf16> to vector<8x8xbf16>
    %cst_20 = arith.constant dense<0.000000e+00> : vector<8x8xf32>
    %56 = tpu.matmul %54, %55, %cst_20 {dimension_numbers = #tpu.dot_dimension_numbers<[1], [0], [0], [1], [0, 0, 1, 1], [], []>} : vector<8x8xbf16>, vector<8x8xbf16>, vector<8x8xf32> -> vector<8x8xf32>
    %57 = vector.extract_strided_slice %20 {offsets = [0, 16], sizes = [8, 8], strides = [1, 1]} : vector<8x32xf32> to vector<8x8xf32>
    %58 = arith.truncf %57 : vector<8x8xf32> to vector<8x8xbf16>
    %59 = vector.extract_strided_slice %21 {offsets = [0, 16], sizes = [8, 8], strides = [1, 1]} : vector<8x32xbf16> to vector<8x8xbf16>
    %cst_21 = arith.constant dense<0.000000e+00> : vector<8x8xf32>
    %60 = tpu.matmul %58, %59, %cst_21 {dimension_numbers = #tpu.dot_dimension_numbers<[1], [1], [0], [0], [0, 0, 1, 0], [], []>} : vector<8x8xbf16>, vector<8x8xbf16>, vector<8x8xf32> -> vector<8x8xf32>
    %cst_22 = arith.constant dense<0xFF800000> : vector<8xf32>
    %61 = vector.multi_reduction <maximumf>, %60, %cst_22 [1] : vector<8x8xf32> to vector<8xf32>
    %62 = vector.shape_cast %61 : vector<8xf32> to vector<8x1xf32>
    %63 = vector.broadcast %62 : vector<8x1xf32> to vector<8x8xf32>
    %64 = arith.subf %60, %63 : vector<8x8xf32>
    %65 = math.exp %64 : vector<8x8xf32>
    %cst_23 = arith.constant dense<0.000000e+00> : vector<8xf32>
    %66 = vector.multi_reduction <add>, %65, %cst_23 [1] : vector<8x8xf32> to vector<8xf32>
    %67 = vector.shape_cast %66 : vector<8xf32> to vector<8x1xf32>
    %68 = tpu.reciprocal %67 {approx = true} : vector<8x1xf32> -> vector<8x1xf32>
    %69 = vector.broadcast %68 : vector<8x1xf32> to vector<8x8xf32>
    %70 = arith.mulf %65, %69 : vector<8x8xf32>
    %71 = arith.truncf %70 : vector<8x8xf32> to vector<8x8xbf16>
    %72 = vector.extract_strided_slice %22 {offsets = [0, 16], sizes = [8, 8], strides = [1, 1]} : vector<8x32xbf16> to vector<8x8xbf16>
    %cst_24 = arith.constant dense<0.000000e+00> : vector<8x8xf32>
    %73 = tpu.matmul %71, %72, %cst_24 {dimension_numbers = #tpu.dot_dimension_numbers<[1], [0], [0], [1], [0, 0, 1, 1], [], []>} : vector<8x8xbf16>, vector<8x8xbf16>, vector<8x8xf32> -> vector<8x8xf32>
    %74 = vector.extract_strided_slice %20 {offsets = [0, 24], sizes = [8, 8], strides = [1, 1]} : vector<8x32xf32> to vector<8x8xf32>
    %75 = arith.truncf %74 : vector<8x8xf32> to vector<8x8xbf16>
    %76 = vector.extract_strided_slice %21 {offsets = [0, 24], sizes = [8, 8], strides = [1, 1]} : vector<8x32xbf16> to vector<8x8xbf16>
    %cst_25 = arith.constant dense<0.000000e+00> : vector<8x8xf32>
    %77 = tpu.matmul %75, %76, %cst_25 {dimension_numbers = #tpu.dot_dimension_numbers<[1], [1], [0], [0], [0, 0, 1, 0], [], []>} : vector<8x8xbf16>, vector<8x8xbf16>, vector<8x8xf32> -> vector<8x8xf32>
    %cst_26 = arith.constant dense<0xFF800000> : vector<8xf32>
    %78 = vector.multi_reduction <maximumf>, %77, %cst_26 [1] : vector<8x8xf32> to vector<8xf32>
    %79 = vector.shape_cast %78 : vector<8xf32> to vector<8x1xf32>
    %80 = vector.broadcast %79 : vector<8x1xf32> to vector<8x8xf32>
    %81 = arith.subf %77, %80 : vector<8x8xf32>
    %82 = math.exp %81 : vector<8x8xf32>
    %cst_27 = arith.constant dense<0.000000e+00> : vector<8xf32>
    %83 = vector.multi_reduction <add>, %82, %cst_27 [1] : vector<8x8xf32> to vector<8xf32>
    %84 = vector.shape_cast %83 : vector<8xf32> to vector<8x1xf32>
    %85 = tpu.reciprocal %84 {approx = true} : vector<8x1xf32> -> vector<8x1xf32>
    %86 = vector.broadcast %85 : vector<8x1xf32> to vector<8x8xf32>
    %87 = arith.mulf %82, %86 : vector<8x8xf32>
    %88 = arith.truncf %87 : vector<8x8xf32> to vector<8x8xbf16>
    %89 = vector.extract_strided_slice %22 {offsets = [0, 24], sizes = [8, 8], strides = [1, 1]} : vector<8x32xbf16> to vector<8x8xbf16>
    %cst_28 = arith.constant dense<0.000000e+00> : vector<8x8xf32>
    %90 = tpu.matmul %88, %89, %cst_28 {dimension_numbers = #tpu.dot_dimension_numbers<[1], [0], [0], [1], [0, 0, 1, 1], [], []>} : vector<8x8xbf16>, vector<8x8xbf16>, vector<8x8xf32> -> vector<8x8xf32>
    %91 = tpu.concatenate %39, %56, %73, %90 in 1 : vector<8x8xf32>, vector<8x8xf32>, vector<8x8xf32>, vector<8x8xf32> -> vector<8x32xf32>
    %92 = arith.truncf %91 : vector<8x32xf32> to vector<8x32xbf16>
    %c0_29 = arith.constant 0 : index
    %c0_30 = arith.constant 0 : index
    %93 = vector.load %arg7[%c0_29, %c0_30] : memref<32x32xbf16, #tpu.memory_space<vmem>>, vector<32x32xbf16>
    %cst_31 = arith.constant dense<0.000000e+00> : vector<8x32xf32>
    %94 = tpu.matmul %92, %93, %cst_31 {dimension_numbers = #tpu.dot_dimension_numbers<[1], [0], [0], [1], [0, 0, 1, 1], [], []>} : vector<8x32xbf16>, vector<32x32xbf16>, vector<8x32xf32> -> vector<8x32xf32>
    %95 = vector.broadcast %4 : vector<1x32xf32> to vector<8x32xf32>
    %96 = arith.addf %94, %95 : vector<8x32xf32>
    %97 = arith.addf %15, %96 : vector<8x32xf32>
    %cst_32 = arith.constant dense<0.000000e+00> : vector<8xf32>
    %98 = vector.multi_reduction <add>, %97, %cst_32 [1] : vector<8x32xf32> to vector<8xf32>
    %99 = vector.shape_cast %98 : vector<8xf32> to vector<8x1xf32>
    %cst_33 = arith.constant 3.200000e+01 : f32
    %100 = vector.broadcast %cst_33 : f32 to vector<8x1xf32>
    %101 = arith.divf %99, %100 : vector<8x1xf32>
    %102 = vector.broadcast %101 : vector<8x1xf32> to vector<8x32xf32>
    %103 = arith.subf %97, %102 : vector<8x32xf32>
    %104 = arith.mulf %103, %103 : vector<8x32xf32>
    %cst_34 = arith.constant dense<0.000000e+00> : vector<8xf32>
    %105 = vector.multi_reduction <add>, %104, %cst_34 [1] : vector<8x32xf32> to vector<8xf32>
    %106 = vector.shape_cast %105 : vector<8xf32> to vector<8x1xf32>
    %cst_35 = arith.constant 3.200000e+01 : f32
    %107 = vector.broadcast %cst_35 : f32 to vector<8x1xf32>
    %108 = arith.divf %106, %107 : vector<8x1xf32>
    %109 = vector.broadcast %101 : vector<8x1xf32> to vector<8x32xf32>
    %110 = arith.subf %97, %109 : vector<8x32xf32>
    %cst_36 = arith.constant 9.99999974E-6 : f32
    %111 = vector.broadcast %cst_36 : f32 to vector<8x1xf32>
    %112 = arith.addf %108, %111 : vector<8x1xf32>
    %113 = math.rsqrt %112 : vector<8x1xf32>
    %114 = vector.broadcast %113 : vector<8x1xf32> to vector<8x32xf32>
    %115 = arith.mulf %110, %114 : vector<8x32xf32>
    %116 = vector.broadcast %5 : vector<1x32xf32> to vector<8x32xf32>
    %117 = arith.mulf %115, %116 : vector<8x32xf32>
    %118 = vector.broadcast %6 : vector<1x32xf32> to vector<8x32xf32>
    %119 = arith.addf %117, %118 : vector<8x32xf32>
    %120 = arith.truncf %119 : vector<8x32xf32> to vector<8x32xbf16>
    %c0_37 = arith.constant 0 : index
    %c0_38 = arith.constant 0 : index
    %121 = vector.load %arg8[%c0_37, %c0_38] : memref<32x64xbf16, #tpu.memory_space<vmem>>, vector<32x64xbf16>
    %cst_39 = arith.constant dense<0.000000e+00> : vector<8x64xf32>
    %122 = tpu.matmul %120, %121, %cst_39 {dimension_numbers = #tpu.dot_dimension_numbers<[1], [0], [0], [1], [0, 0, 1, 1], [], []>} : vector<8x32xbf16>, vector<32x64xbf16>, vector<8x64xf32> -> vector<8x64xf32>
    %123 = vector.broadcast %10 : vector<1x64xf32> to vector<8x64xf32>
    %124 = arith.addf %122, %123 : vector<8x64xf32>
    %cst_40 = arith.constant 0.000000e+00 : f32
    %125 = vector.broadcast %cst_40 : f32 to vector<8x64xf32>
    %126 = arith.maximumf %124, %125 : vector<8x64xf32>
    %127 = arith.truncf %126 : vector<8x64xf32> to vector<8x64xbf16>
    %c0_41 = arith.constant 0 : index
    %c0_42 = arith.constant 0 : index
    %128 = vector.load %arg9[%c0_41, %c0_42] : memref<64x32xbf16, #tpu.memory_space<vmem>>, vector<64x32xbf16>
    %cst_43 = arith.constant dense<0.000000e+00> : vector<8x32xf32>
    %129 = tpu.matmul %127, %128, %cst_43 {dimension_numbers = #tpu.dot_dimension_numbers<[1], [0], [0], [1], [0, 0, 1, 1], [], []>} : vector<8x64xbf16>, vector<64x32xbf16>, vector<8x32xf32> -> vector<8x32xf32>
    %130 = vector.broadcast %9 : vector<1x32xf32> to vector<8x32xf32>
    %131 = arith.addf %129, %130 : vector<8x32xf32>
    %132 = arith.addf %119, %131 : vector<8x32xf32>
    %cst_44 = arith.constant dense<0.000000e+00> : vector<8xf32>
    %133 = vector.multi_reduction <add>, %132, %cst_44 [1] : vector<8x32xf32> to vector<8xf32>
    %134 = vector.shape_cast %133 : vector<8xf32> to vector<8x1xf32>
    %cst_45 = arith.constant 3.200000e+01 : f32
    %135 = vector.broadcast %cst_45 : f32 to vector<8x1xf32>
    %136 = arith.divf %134, %135 : vector<8x1xf32>
    %137 = vector.broadcast %136 : vector<8x1xf32> to vector<8x32xf32>
    %138 = arith.subf %132, %137 : vector<8x32xf32>
    %139 = arith.mulf %138, %138 : vector<8x32xf32>
    %cst_46 = arith.constant dense<0.000000e+00> : vector<8xf32>
    %140 = vector.multi_reduction <add>, %139, %cst_46 [1] : vector<8x32xf32> to vector<8xf32>
    %141 = vector.shape_cast %140 : vector<8xf32> to vector<8x1xf32>
    %cst_47 = arith.constant 3.200000e+01 : f32
    %142 = vector.broadcast %cst_47 : f32 to vector<8x1xf32>
    %143 = arith.divf %141, %142 : vector<8x1xf32>
    %144 = vector.broadcast %136 : vector<8x1xf32> to vector<8x32xf32>
    %145 = arith.subf %132, %144 : vector<8x32xf32>
    %cst_48 = arith.constant 9.99999974E-6 : f32
    %146 = vector.broadcast %cst_48 : f32 to vector<8x1xf32>
    %147 = arith.addf %143, %146 : vector<8x1xf32>
    %148 = math.rsqrt %147 : vector<8x1xf32>
    %149 = vector.broadcast %148 : vector<8x1xf32> to vector<8x32xf32>
    %150 = arith.mulf %145, %149 : vector<8x32xf32>
    %151 = vector.broadcast %7 : vector<1x32xf32> to vector<8x32xf32>
    %152 = arith.mulf %150, %151 : vector<8x32xf32>
    %153 = vector.broadcast %8 : vector<1x32xf32> to vector<8x32xf32>
    %154 = arith.addf %152, %153 : vector<8x32xf32>
    %c0_49 = arith.constant 0 : index
    %c0_50 = arith.constant 0 : index
    %c0_51 = arith.constant 0 : index
    %155 = vector.load %arg12[%c0_49, %c0_50, %c0_51] : memref<1x8x32xf32, #tpu.memory_space<vmem>>, vector<1x8x32xf32>
    %156 = vector.shape_cast %155 : vector<1x8x32xf32> to vector<8x32xf32>
    %157 = vector.shape_cast %154 : vector<8x32xf32> to vector<1x8x32xf32>
    tpu.vector_store %arg12[%c0_49, %c0_50, %c0_51], %157 {strides = array<i32>} : memref<1x8x32xf32, #tpu.memory_space<vmem>>, vector<1x8x32xf32>,
    return
  }
  func.func @transform_0(%arg0: i32, %arg1: i32) -> (i32, i32, i32) {
    %c0_i32 = arith.constant 0 : i32
    %c0_i32_0 = arith.constant 0 : i32
    return %arg0, %arg1, %c0_i32 : i32, i32, i32
  }
  func.func @transform_1(%arg0: i32, %arg1: i32) -> (i32, i32, i32) {
    %c0_i32 = arith.constant 0 : i32
    %c0_i32_0 = arith.constant 0 : i32
    %c0_i32_1 = arith.constant 0 : i32
    return %arg0, %c0_i32, %c0_i32_0 : i32, i32, i32
  }
  func.func @transform_2(%arg0: i32, %arg1: i32) -> (i32, i32) {
    %c0_i32 = arith.constant 0 : i32
    %c0_i32_0 = arith.constant 0 : i32
    %c0_i32_1 = arith.constant 0 : i32
    return %c0_i32, %c0_i32_0 : i32, i32
  }
  func.func @transform_3(%arg0: i32, %arg1: i32) -> (i32, i32) {
    %c0_i32 = arith.constant 0 : i32
    %c0_i32_0 = arith.constant 0 : i32
    %c0_i32_1 = arith.constant 0 : i32
    return %c0_i32, %c0_i32_0 : i32, i32
  }
  func.func @transform_4(%arg0: i32, %arg1: i32) -> (i32, i32) {
    %c0_i32 = arith.constant 0 : i32
    %c0_i32_0 = arith.constant 0 : i32
    %c0_i32_1 = arith.constant 0 : i32
    return %c0_i32, %c0_i32_0 : i32, i32
  }
  func.func @transform_5(%arg0: i32, %arg1: i32) -> (i32, i32) {
    %c0_i32 = arith.constant 0 : i32
    %c0_i32_0 = arith.constant 0 : i32
    %c0_i32_1 = arith.constant 0 : i32
    return %c0_i32, %c0_i32_0 : i32, i32
  }
  func.func @transform_6(%arg0: i32, %arg1: i32) -> (i32, i32) {
    %c0_i32 = arith.constant 0 : i32
    %c0_i32_0 = arith.constant 0 : i32
    %c0_i32_1 = arith.constant 0 : i32
    return %c0_i32, %c0_i32_0 : i32, i32
  }
  func.func @transform_7(%arg0: i32, %arg1: i32) -> (i32, i32) {
    %c0_i32 = arith.constant 0 : i32
    %c0_i32_0 = arith.constant 0 : i32
    %c0_i32_1 = arith.constant 0 : i32
    return %c0_i32, %c0_i32_0 : i32, i32
  }
  func.func @transform_8(%arg0: i32, %arg1: i32) -> (i32, i32) {
    %c0_i32 = arith.constant 0 : i32
    %c0_i32_0 = arith.constant 0 : i32
    %c0_i32_1 = arith.constant 0 : i32
    return %c0_i32, %c0_i32_0 : i32, i32
  }
  func.func @transform_9(%arg0: i32, %arg1: i32) -> (i32, i32) {
    %c0_i32 = arith.constant 0 : i32
    %c0_i32_0 = arith.constant 0 : i32
    %c0_i32_1 = arith.constant 0 : i32
    return %c0_i32, %c0_i32_0 : i32, i32
  }
  func.func @transform_10(%arg0: i32, %arg1: i32) -> (i32, i32, i32) {
    %c0_i32 = arith.constant 0 : i32
    %c0_i32_0 = arith.constant 0 : i32
    return %arg0, %arg1, %c0_i32 : i32, i32, i32
  }
}

module attributes {stable_mosaic.version = 11 : i64} {
  func.func @_encoder_layer_kernel(%arg0: i32, %arg1: i32, %arg2: memref<1x8x32xf32, #tpu.memory_space<vmem>>, %arg3: memref<1x8x32xbf16, #tpu.memory_space<vmem>>, %arg4: memref<32x32xbf16, #tpu.memory_space<vmem>>, %arg5: memref<32x32xbf16, #tpu.memory_space<vmem>>, %arg6: memref<32x32xbf16, #tpu.memory_space<vmem>>, %arg7: memref<32x32xbf16, #tpu.memory_space<vmem>>, %arg8: memref<32x64xbf16, #tpu.memory_space<vmem>>, %arg9: memref<64x32xbf16, #tpu.memory_space<vmem>>, %arg10: memref<9x32xf32, #tpu.memory_space<vmem>>, %arg11: memref<1x64xf32, #tpu.memory_space<vmem>>, %arg12: memref<1x8x32xf32, #tpu.memory_space<vmem>>, %arg13: memref<8x32xbf16, #tpu.memory_space<vmem>>, %arg14: memref<8x32xbf16, #tpu.memory_space<vmem>>) attributes {dimension_semantics = [#tpu.dimension_semantics<parallel>, #tpu.dimension_semantics<arbitrary>], iteration_bounds = array<i64: 2, 1>, scalar_prefetch = 0 : i64, scratch_operands = 2 : i64, tpu.core_type = #tpu.core_type<tc>, window_params = [{transform_indices = @transform_0, window_bounds = array<i64: 1, 8, 32>}, {transform_indices = @transform_1, window_bounds = array<i64: 1, 8, 32>}, {pipeline_mode = #tpu.pipeline_mode<synchronous>, transform_indices = @transform_2, window_bounds = array<i64: 32, 32>}, {pipeline_mode = #tpu.pipeline_mode<synchronous>, transform_indices = @transform_3, window_bounds = array<i64: 32, 32>}, {pipeline_mode = #tpu.pipeline_mode<synchronous>, transform_indices = @transform_4, window_bounds = array<i64: 32, 32>}, {pipeline_mode = #tpu.pipeline_mode<synchronous>, transform_indices = @transform_5, window_bounds = array<i64: 32, 32>}, {pipeline_mode = #tpu.pipeline_mode<synchronous>, transform_indices = @transform_6, window_bounds = array<i64: 32, 64>}, {pipeline_mode = #tpu.pipeline_mode<synchronous>, transform_indices = @transform_7, window_bounds = array<i64: 64, 32>}, {pipeline_mode = #tpu.pipeline_mode<synchronous>, transform_indices = @transform_8, window_bounds = array<i64: 9, 32>}, {pipeline_mode = #tpu.pipeline_mode<synchronous>, transform_indices = @transform_9, window_bounds = array<i64: 1, 64>}, {transform_indices = @transform_10, window_bounds = array<i64: 1, 8, 32>}]} {
    %c0 = arith.constant 0 : index
    %c0_0 = arith.constant 0 : index
    %0 = vector.load %arg10[%c0, %c0_0] : memref<9x32xf32, #tpu.memory_space<vmem>>, vector<9x32xf32>
    %1 = vector.extract_strided_slice %0 {offsets = [0, 0], sizes = [1, 32], strides = [1, 1]} : vector<9x32xf32> to vector<1x32xf32>
    %2 = vector.extract_strided_slice %0 {offsets = [1, 0], sizes = [1, 32], strides = [1, 1]} : vector<9x32xf32> to vector<1x32xf32>
    %3 = vector.extract_strided_slice %0 {offsets = [2, 0], sizes = [1, 32], strides = [1, 1]} : vector<9x32xf32> to vector<1x32xf32>
    %4 = vector.extract_strided_slice %0 {offsets = [3, 0], sizes = [1, 32], strides = [1, 1]} : vector<9x32xf32> to vector<1x32xf32>
    %5 = vector.extract_strided_slice %0 {offsets = [4, 0], sizes = [1, 32], strides = [1, 1]} : vector<9x32xf32> to vector<1x32xf32>
    %6 = vector.extract_strided_slice %0 {offsets = [5, 0], sizes = [1, 32], strides = [1, 1]} : vector<9x32xf32> to vector<1x32xf32>
    %7 = vector.extract_strided_slice %0 {offsets = [6, 0], sizes = [1, 32], strides = [1, 1]} : vector<9x32xf32> to vector<1x32xf32>
    %8 = vector.extract_strided_slice %0 {offsets = [7, 0], sizes = [1, 32], strides = [1, 1]} : vector<9x32xf32> to vector<1x32xf32>
    %9 = vector.extract_strided_slice %0 {offsets = [8, 0], sizes = [1, 32], strides = [1, 1]} : vector<9x32xf32> to vector<1x32xf32>
    %c0_1 = arith.constant 0 : index
    %c0_2 = arith.constant 0 : index
    %10 = vector.load %arg11[%c0_1, %c0_2] : memref<1x64xf32, #tpu.memory_space<vmem>>, vector<1x64xf32>
    %c0_i32 = arith.constant 0 : i32
    %11 = arith.cmpi eq, %arg1, %c0_i32 : i32
    %12 = arith.extui %11 : i1 to i32
    %c0_i32_3 = arith.constant 0 : i32
    %13 = arith.cmpi ne, %12, %c0_i32_3 : i32
    scf.if %13 {
      %c0_52 = arith.constant 0 : index
      %c0_53 = arith.constant 0 : index
      %c0_54 = arith.constant 0 : index
      %158 = vector.load %arg3[%c0_52, %c0_53, %c0_54] : memref<1x8x32xbf16, #tpu.memory_space<vmem>>, vector<1x8x32xbf16>
      %159 = vector.shape_cast %158 : vector<1x8x32xbf16> to vector<8x32xbf16>
      %c0_55 = arith.constant 0 : index
      %c0_56 = arith.constant 0 : index
      %160 = vector.load %arg5[%c0_55, %c0_56] : memref<32x32xbf16, #tpu.memory_space<vmem>>, vector<32x32xbf16>
      %cst_57 = arith.constant dense<0.000000e+00> : vector<8x32xf32>
      %161 = tpu.matmul %159, %160, %cst_57 {dimension_numbers = #tpu.dot_dimension_numbers<[1], [0], [0], [1], [0, 0, 1, 1], [], []>} : vector<8x32xbf16>, vector<32x32xbf16>, vector<8x32xf32> -> vector<8x32xf32>
      %162 = vector.broadcast %2 : vector<1x32xf32> to vector<8x32xf32>
      %163 = arith.addf %161, %162 : vector<8x32xf32>
      %c0_58 = arith.constant 0 : index
      %c0_59 = arith.constant 0 : index
      %164 = vector.load %arg6[%c0_58, %c0_59] : memref<32x32xbf16, #tpu.memory_space<vmem>>, vector<32x32xbf16>
      %cst_60 = arith.constant dense<0.000000e+00> : vector<8x32xf32>
      %165 = tpu.matmul %159, %164, %cst_60 {dimension_numbers = #tpu.dot_dimension_numbers<[1], [0], [0], [1], [0, 0, 1, 1], [], []>} : vector<8x32xbf16>, vector<32x32xbf16>, vector<8x32xf32> -> vector<8x32xf32>
      %166 = vector.broadcast %3 : vector<1x32xf32> to vector<8x32xf32>
      %167 = arith.addf %165, %166 : vector<8x32xf32>
      %168 = arith.truncf %163 : vector<8x32xf32> to vector<8x32xbf16>
      %c0_61 = arith.constant 0 : index
      %c0_62 = arith.constant 0 : index
      %169 = vector.load %arg13[%c0_61, %c0_62] : memref<8x32xbf16, #tpu.memory_space<vmem>>, vector<8x32xbf16>
      tpu.vector_store %arg13[%c0_61, %c0_62], %168 {strides = array<i32>} : memref<8x32xbf16, #tpu.memory_space<vmem>>, vector<8x32xbf16>,
      %170 = arith.truncf %167 : vector<8x32xf32> to vector<8x32xbf16>
      %c0_63 = arith.constant 0 : index
      %c0_64 = arith.constant 0 : index
      %171 = vector.load %arg14[%c0_63, %c0_64] : memref<8x32xbf16, #tpu.memory_space<vmem>>, vector<8x32xbf16>
      tpu.vector_store %arg14[%c0_63, %c0_64], %170 {strides = array<i32>} : memref<8x32xbf16, #tpu.memory_space<vmem>>, vector<8x32xbf16>,
    } else {
    }
    %c0_4 = arith.constant 0 : index
    %c0_5 = arith.constant 0 : index
    %c0_6 = arith.constant 0 : index
    %14 = vector.load %arg2[%c0_4, %c0_5, %c0_6] : memref<1x8x32xf32, #tpu.memory_space<vmem>>, vector<1x8x32xf32>
    %15 = vector.shape_cast %14 : vector<1x8x32xf32> to vector<8x32xf32>
    %16 = arith.truncf %15 : vector<8x32xf32> to vector<8x32xbf16>
    %c0_7 = arith.constant 0 : index
    %c0_8 = arith.constant 0 : index
    %17 = vector.load %arg4[%c0_7, %c0_8] : memref<32x32xbf16, #tpu.memory_space<vmem>>, vector<32x32xbf16>
    %cst = arith.constant dense<0.000000e+00> : vector<8x32xf32>
    %18 = tpu.matmul %16, %17, %cst {dimension_numbers = #tpu.dot_dimension_numbers<[1], [0], [0], [1], [0, 0, 1, 1], [], []>} : vector<8x32xbf16>, vector<32x32xbf16>, vector<8x32xf32> -> vector<8x32xf32>
    %19 = vector.broadcast %1 : vector<1x32xf32> to vector<8x32xf32>
    %20 = arith.addf %18, %19 : vector<8x32xf32>
    %c0_9 = arith.constant 0 : index
    %c0_10 = arith.constant 0 : index
    %21 = vector.load %arg13[%c0_9, %c0_10] : memref<8x32xbf16, #tpu.memory_space<vmem>>, vector<8x32xbf16>
    %c0_11 = arith.constant 0 : index
    %c0_12 = arith.constant 0 : index
    %22 = vector.load %arg14[%c0_11, %c0_12] : memref<8x32xbf16, #tpu.memory_space<vmem>>, vector<8x32xbf16>
    %23 = vector.extract_strided_slice %20 {offsets = [0, 0], sizes = [8, 8], strides = [1, 1]} : vector<8x32xf32> to vector<8x8xf32>
    %24 = arith.truncf %23 : vector<8x8xf32> to vector<8x8xbf16>
    %25 = vector.extract_strided_slice %21 {offsets = [0, 0], sizes = [8, 8], strides = [1, 1]} : vector<8x32xbf16> to vector<8x8xbf16>
    %cst_13 = arith.constant dense<0.000000e+00> : vector<8x8xf32>
    %26 = tpu.matmul %24, %25, %cst_13 {dimension_numbers = #tpu.dot_dimension_numbers<[1], [1], [0], [0], [0, 0, 1, 0], [], []>} : vector<8x8xbf16>, vector<8x8xbf16>, vector<8x8xf32> -> vector<8x8xf32>
    %cst_14 = arith.constant dense<0xFF800000> : vector<8xf32>
    %27 = vector.multi_reduction <maximumf>, %26, %cst_14 [1] : vector<8x8xf32> to vector<8xf32>
    %28 = vector.shape_cast %27 : vector<8xf32> to vector<8x1xf32>
    %29 = vector.broadcast %28 : vector<8x1xf32> to vector<8x8xf32>
    %30 = arith.subf %26, %29 : vector<8x8xf32>
    %31 = math.exp %30 : vector<8x8xf32>
    %cst_15 = arith.constant dense<0.000000e+00> : vector<8xf32>
    %32 = vector.multi_reduction <add>, %31, %cst_15 [1] : vector<8x8xf32> to vector<8xf32>
    %33 = vector.shape_cast %32 : vector<8xf32> to vector<8x1xf32>
    %34 = tpu.reciprocal %33 {approx = true} : vector<8x1xf32> -> vector<8x1xf32>
    %35 = vector.broadcast %34 : vector<8x1xf32> to vector<8x8xf32>
    %36 = arith.mulf %31, %35 : vector<8x8xf32>
    %37 = arith.truncf %36 : vector<8x8xf32> to vector<8x8xbf16>
    %38 = vector.extract_strided_slice %22 {offsets = [0, 0], sizes = [8, 8], strides = [1, 1]} : vector<8x32xbf16> to vector<8x8xbf16>
    %cst_16 = arith.constant dense<0.000000e+00> : vector<8x8xf32>
    %39 = tpu.matmul %37, %38, %cst_16 {dimension_numbers = #tpu.dot_dimension_numbers<[1], [0], [0], [1], [0, 0, 1, 1], [], []>} : vector<8x8xbf16>, vector<8x8xbf16>, vector<8x8xf32> -> vector<8x8xf32>
    %40 = vector.extract_strided_slice %20 {offsets = [0, 8], sizes = [8, 8], strides = [1, 1]} : vector<8x32xf32> to vector<8x8xf32>
    %41 = arith.truncf %40 : vector<8x8xf32> to vector<8x8xbf16>
    %42 = vector.extract_strided_slice %21 {offsets = [0, 8], sizes = [8, 8], strides = [1, 1]} : vector<8x32xbf16> to vector<8x8xbf16>
    %cst_17 = arith.constant dense<0.000000e+00> : vector<8x8xf32>
    %43 = tpu.matmul %41, %42, %cst_17 {dimension_numbers = #tpu.dot_dimension_numbers<[1], [1], [0], [0], [0, 0, 1, 0], [], []>} : vector<8x8xbf16>, vector<8x8xbf16>, vector<8x8xf32> -> vector<8x8xf32>
    %cst_18 = arith.constant dense<0xFF800000> : vector<8xf32>
    %44 = vector.multi_reduction <maximumf>, %43, %cst_18 [1] : vector<8x8xf32> to vector<8xf32>
    %45 = vector.shape_cast %44 : vector<8xf32> to vector<8x1xf32>
    %46 = vector.broadcast %45 : vector<8x1xf32> to vector<8x8xf32>
    %47 = arith.subf %43, %46 : vector<8x8xf32>
    %48 = math.exp %47 : vector<8x8xf32>
    %cst_19 = arith.constant dense<0.000000e+00> : vector<8xf32>
    %49 = vector.multi_reduction <add>, %48, %cst_19 [1] : vector<8x8xf32> to vector<8xf32>
    %50 = vector.shape_cast %49 : vector<8xf32> to vector<8x1xf32>
    %51 = tpu.reciprocal %50 {approx = true} : vector<8x1xf32> -> vector<8x1xf32>
    %52 = vector.broadcast %51 : vector<8x1xf32> to vector<8x8xf32>
    %53 = arith.mulf %48, %52 : vector<8x8xf32>
    %54 = arith.truncf %53 : vector<8x8xf32> to vector<8x8xbf16>
    %55 = vector.extract_strided_slice %22 {offsets = [0, 8], sizes = [8, 8], strides = [1, 1]} : vector<8x32xbf16> to vector<8x8xbf16>
    %cst_20 = arith.constant dense<0.000000e+00> : vector<8x8xf32>
    %56 = tpu.matmul %54, %55, %cst_20 {dimension_numbers = #tpu.dot_dimension_numbers<[1], [0], [0], [1], [0, 0, 1, 1], [], []>} : vector<8x8xbf16>, vector<8x8xbf16>, vector<8x8xf32> -> vector<8x8xf32>
    %57 = vector.extract_strided_slice %20 {offsets = [0, 16], sizes = [8, 8], strides = [1, 1]} : vector<8x32xf32> to vector<8x8xf32>
    %58 = arith.truncf %57 : vector<8x8xf32> to vector<8x8xbf16>
    %59 = vector.extract_strided_slice %21 {offsets = [0, 16], sizes = [8, 8], strides = [1, 1]} : vector<8x32xbf16> to vector<8x8xbf16>
    %cst_21 = arith.constant dense<0.000000e+00> : vector<8x8xf32>
    %60 = tpu.matmul %58, %59, %cst_21 {dimension_numbers = #tpu.dot_dimension_numbers<[1], [1], [0], [0], [0, 0, 1, 0], [], []>} : vector<8x8xbf16>, vector<8x8xbf16>, vector<8x8xf32> -> vector<8x8xf32>
    %cst_22 = arith.constant dense<0xFF800000> : vector<8xf32>
    %61 = vector.multi_reduction <maximumf>, %60, %cst_22 [1] : vector<8x8xf32> to vector<8xf32>
    %62 = vector.shape_cast %61 : vector<8xf32> to vector<8x1xf32>
    %63 = vector.broadcast %62 : vector<8x1xf32> to vector<8x8xf32>
    %64 = arith.subf %60, %63 : vector<8x8xf32>
    %65 = math.exp %64 : vector<8x8xf32>
    %cst_23 = arith.constant dense<0.000000e+00> : vector<8xf32>
    %66 = vector.multi_reduction <add>, %65, %cst_23 [1] : vector<8x8xf32> to vector<8xf32>
    %67 = vector.shape_cast %66 : vector<8xf32> to vector<8x1xf32>
    %68 = tpu.reciprocal %67 {approx = true} : vector<8x1xf32> -> vector<8x1xf32>
    %69 = vector.broadcast %68 : vector<8x1xf32> to vector<8x8xf32>
    %70 = arith.mulf %65, %69 : vector<8x8xf32>
    %71 = arith.truncf %70 : vector<8x8xf32> to vector<8x8xbf16>
    %72 = vector.extract_strided_slice %22 {offsets = [0, 16], sizes = [8, 8], strides = [1, 1]} : vector<8x32xbf16> to vector<8x8xbf16>
    %cst_24 = arith.constant dense<0.000000e+00> : vector<8x8xf32>
    %73 = tpu.matmul %71, %72, %cst_24 {dimension_numbers = #tpu.dot_dimension_numbers<[1], [0], [0], [1], [0, 0, 1, 1], [], []>} : vector<8x8xbf16>, vector<8x8xbf16>, vector<8x8xf32> -> vector<8x8xf32>
    %74 = vector.extract_strided_slice %20 {offsets = [0, 24], sizes = [8, 8], strides = [1, 1]} : vector<8x32xf32> to vector<8x8xf32>
    %75 = arith.truncf %74 : vector<8x8xf32> to vector<8x8xbf16>
    %76 = vector.extract_strided_slice %21 {offsets = [0, 24], sizes = [8, 8], strides = [1, 1]} : vector<8x32xbf16> to vector<8x8xbf16>
    %cst_25 = arith.constant dense<0.000000e+00> : vector<8x8xf32>
    %77 = tpu.matmul %75, %76, %cst_25 {dimension_numbers = #tpu.dot_dimension_numbers<[1], [1], [0], [0], [0, 0, 1, 0], [], []>} : vector<8x8xbf16>, vector<8x8xbf16>, vector<8x8xf32> -> vector<8x8xf32>
    %cst_26 = arith.constant dense<0xFF800000> : vector<8xf32>
    %78 = vector.multi_reduction <maximumf>, %77, %cst_26 [1] : vector<8x8xf32> to vector<8xf32>
    %79 = vector.shape_cast %78 : vector<8xf32> to vector<8x1xf32>
    %80 = vector.broadcast %79 : vector<8x1xf32> to vector<8x8xf32>
    %81 = arith.subf %77, %80 : vector<8x8xf32>
    %82 = math.exp %81 : vector<8x8xf32>
    %cst_27 = arith.constant dense<0.000000e+00> : vector<8xf32>
    %83 = vector.multi_reduction <add>, %82, %cst_27 [1] : vector<8x8xf32> to vector<8xf32>
    %84 = vector.shape_cast %83 : vector<8xf32> to vector<8x1xf32>
    %85 = tpu.reciprocal %84 {approx = true} : vector<8x1xf32> -> vector<8x1xf32>
    %86 = vector.broadcast %85 : vector<8x1xf32> to vector<8x8xf32>
    %87 = arith.mulf %82, %86 : vector<8x8xf32>
    %88 = arith.truncf %87 : vector<8x8xf32> to vector<8x8xbf16>
    %89 = vector.extract_strided_slice %22 {offsets = [0, 24], sizes = [8, 8], strides = [1, 1]} : vector<8x32xbf16> to vector<8x8xbf16>
    %cst_28 = arith.constant dense<0.000000e+00> : vector<8x8xf32>
    %90 = tpu.matmul %88, %89, %cst_28 {dimension_numbers = #tpu.dot_dimension_numbers<[1], [0], [0], [1], [0, 0, 1, 1], [], []>} : vector<8x8xbf16>, vector<8x8xbf16>, vector<8x8xf32> -> vector<8x8xf32>
    %91 = tpu.concatenate %39, %56, %73, %90 in 1 : vector<8x8xf32>, vector<8x8xf32>, vector<8x8xf32>, vector<8x8xf32> -> vector<8x32xf32>
    %92 = arith.truncf %91 : vector<8x32xf32> to vector<8x32xbf16>
    %c0_29 = arith.constant 0 : index
    %c0_30 = arith.constant 0 : index
    %93 = vector.load %arg7[%c0_29, %c0_30] : memref<32x32xbf16, #tpu.memory_space<vmem>>, vector<32x32xbf16>
    %cst_31 = arith.constant dense<0.000000e+00> : vector<8x32xf32>
    %94 = tpu.matmul %92, %93, %cst_31 {dimension_numbers = #tpu.dot_dimension_numbers<[1], [0], [0], [1], [0, 0, 1, 1], [], []>} : vector<8x32xbf16>, vector<32x32xbf16>, vector<8x32xf32> -> vector<8x32xf32>
    %95 = vector.broadcast %4 : vector<1x32xf32> to vector<8x32xf32>
    %96 = arith.addf %94, %95 : vector<8x32xf32>
    %97 = arith.addf %15, %96 : vector<8x32xf32>
    %cst_32 = arith.constant dense<0.000000e+00> : vector<8xf32>
    %98 = vector.multi_reduction <add>, %97, %cst_32 [1] : vector<8x32xf32> to vector<8xf32>
    %99 = vector.shape_cast %98 : vector<8xf32> to vector<8x1xf32>
    %cst_33 = arith.constant 3.200000e+01 : f32
    %100 = vector.broadcast %cst_33 : f32 to vector<8x1xf32>
    %101 = arith.divf %99, %100 : vector<8x1xf32>
    %102 = vector.broadcast %101 : vector<8x1xf32> to vector<8x32xf32>
    %103 = arith.subf %97, %102 : vector<8x32xf32>
    %104 = arith.mulf %103, %103 : vector<8x32xf32>
    %cst_34 = arith.constant dense<0.000000e+00> : vector<8xf32>
    %105 = vector.multi_reduction <add>, %104, %cst_34 [1] : vector<8x32xf32> to vector<8xf32>
    %106 = vector.shape_cast %105 : vector<8xf32> to vector<8x1xf32>
    %cst_35 = arith.constant 3.200000e+01 : f32
    %107 = vector.broadcast %cst_35 : f32 to vector<8x1xf32>
    %108 = arith.divf %106, %107 : vector<8x1xf32>
    %109 = vector.broadcast %101 : vector<8x1xf32> to vector<8x32xf32>
    %110 = arith.subf %97, %109 : vector<8x32xf32>
    %cst_36 = arith.constant 9.99999974E-6 : f32
    %111 = vector.broadcast %cst_36 : f32 to vector<8x1xf32>
    %112 = arith.addf %108, %111 : vector<8x1xf32>
    %113 = math.rsqrt %112 : vector<8x1xf32>
    %114 = vector.broadcast %113 : vector<8x1xf32> to vector<8x32xf32>
    %115 = arith.mulf %110, %114 : vector<8x32xf32>
    %116 = vector.broadcast %5 : vector<1x32xf32> to vector<8x32xf32>
    %117 = arith.mulf %115, %116 : vector<8x32xf32>
    %118 = vector.broadcast %6 : vector<1x32xf32> to vector<8x32xf32>
    %119 = arith.addf %117, %118 : vector<8x32xf32>
    %120 = arith.truncf %119 : vector<8x32xf32> to vector<8x32xbf16>
    %c0_37 = arith.constant 0 : index
    %c0_38 = arith.constant 0 : index
    %121 = vector.load %arg8[%c0_37, %c0_38] : memref<32x64xbf16, #tpu.memory_space<vmem>>, vector<32x64xbf16>
    %cst_39 = arith.constant dense<0.000000e+00> : vector<8x64xf32>
    %122 = tpu.matmul %120, %121, %cst_39 {dimension_numbers = #tpu.dot_dimension_numbers<[1], [0], [0], [1], [0, 0, 1, 1], [], []>} : vector<8x32xbf16>, vector<32x64xbf16>, vector<8x64xf32> -> vector<8x64xf32>
    %123 = vector.broadcast %10 : vector<1x64xf32> to vector<8x64xf32>
    %124 = arith.addf %122, %123 : vector<8x64xf32>
    %cst_40 = arith.constant 0.000000e+00 : f32
    %125 = vector.broadcast %cst_40 : f32 to vector<8x64xf32>
    %126 = arith.maximumf %124, %125 : vector<8x64xf32>
    %127 = arith.truncf %126 : vector<8x64xf32> to vector<8x64xbf16>
    %c0_41 = arith.constant 0 : index
    %c0_42 = arith.constant 0 : index
    %128 = vector.load %arg9[%c0_41, %c0_42] : memref<64x32xbf16, #tpu.memory_space<vmem>>, vector<64x32xbf16>
    %cst_43 = arith.constant dense<0.000000e+00> : vector<8x32xf32>
    %129 = tpu.matmul %127, %128, %cst_43 {dimension_numbers = #tpu.dot_dimension_numbers<[1], [0], [0], [1], [0, 0, 1, 1], [], []>} : vector<8x64xbf16>, vector<64x32xbf16>, vector<8x32xf32> -> vector<8x32xf32>
    %130 = vector.broadcast %9 : vector<1x32xf32> to vector<8x32xf32>
    %131 = arith.addf %129, %130 : vector<8x32xf32>
    %132 = arith.addf %119, %131 : vector<8x32xf32>
    %cst_44 = arith.constant dense<0.000000e+00> : vector<8xf32>
    %133 = vector.multi_reduction <add>, %132, %cst_44 [1] : vector<8x32xf32> to vector<8xf32>
    %134 = vector.shape_cast %133 : vector<8xf32> to vector<8x1xf32>
    %cst_45 = arith.constant 3.200000e+01 : f32
    %135 = vector.broadcast %cst_45 : f32 to vector<8x1xf32>
    %136 = arith.divf %134, %135 : vector<8x1xf32>
    %137 = vector.broadcast %136 : vector<8x1xf32> to vector<8x32xf32>
    %138 = arith.subf %132, %137 : vector<8x32xf32>
    %139 = arith.mulf %138, %138 : vector<8x32xf32>
    %cst_46 = arith.constant dense<0.000000e+00> : vector<8xf32>
    %140 = vector.multi_reduction <add>, %139, %cst_46 [1] : vector<8x32xf32> to vector<8xf32>
    %141 = vector.shape_cast %140 : vector<8xf32> to vector<8x1xf32>
    %cst_47 = arith.constant 3.200000e+01 : f32
    %142 = vector.broadcast %cst_47 : f32 to vector<8x1xf32>
    %143 = arith.divf %141, %142 : vector<8x1xf32>
    %144 = vector.broadcast %136 : vector<8x1xf32> to vector<8x32xf32>
    %145 = arith.subf %132, %144 : vector<8x32xf32>
    %cst_48 = arith.constant 9.99999974E-6 : f32
    %146 = vector.broadcast %cst_48 : f32 to vector<8x1xf32>
    %147 = arith.addf %143, %146 : vector<8x1xf32>
    %148 = math.rsqrt %147 : vector<8x1xf32>
    %149 = vector.broadcast %148 : vector<8x1xf32> to vector<8x32xf32>
    %150 = arith.mulf %145, %149 : vector<8x32xf32>
    %151 = vector.broadcast %7 : vector<1x32xf32> to vector<8x32xf32>
    %152 = arith.mulf %150, %151 : vector<8x32xf32>
    %153 = vector.broadcast %8 : vector<1x32xf32> to vector<8x32xf32>
    %154 = arith.addf %152, %153 : vector<8x32xf32>
    %c0_49 = arith.constant 0 : index
    %c0_50 = arith.constant 0 : index
    %c0_51 = arith.constant 0 : index
    %155 = vector.load %arg12[%c0_49, %c0_50, %c0_51] : memref<1x8x32xf32, #tpu.memory_space<vmem>>, vector<1x8x32xf32>
    %156 = vector.shape_cast %155 : vector<1x8x32xf32> to vector<8x32xf32>
    %157 = vector.shape_cast %154 : vector<8x32xf32> to vector<1x8x32xf32>
    tpu.vector_store %arg12[%c0_49, %c0_50, %c0_51], %157 {strides = array<i32>} : memref<1x8x32xf32, #tpu.memory_space<vmem>>, vector<1x8x32xf32>,
    return
  }
  func.func @transform_0(%arg0: i32, %arg1: i32) -> (i32, i32, i32) {
    %c0_i32 = arith.constant 0 : i32
    %c0_i32_0 = arith.constant 0 : i32
    return %arg0, %arg1, %c0_i32 : i32, i32, i32
  }
  func.func @transform_1(%arg0: i32, %arg1: i32) -> (i32, i32, i32) {
    %c0_i32 = arith.constant 0 : i32
    %c0_i32_0 = arith.constant 0 : i32
    %c0_i32_1 = arith.constant 0 : i32
    return %arg0, %c0_i32, %c0_i32_0 : i32, i32, i32
  }
  func.func @transform_2(%arg0: i32, %arg1: i32) -> (i32, i32) {
    %c0_i32 = arith.constant 0 : i32
    %c0_i32_0 = arith.constant 0 : i32
    %c0_i32_1 = arith.constant 0 : i32
    return %c0_i32, %c0_i32_0 : i32, i32
  }
  func.func @transform_3(%arg0: i32, %arg1: i32) -> (i32, i32) {
    %c0_i32 = arith.constant 0 : i32
    %c0_i32_0 = arith.constant 0 : i32
    %c0_i32_1 = arith.constant 0 : i32
    return %c0_i32, %c0_i32_0 : i32, i32
  }
  func.func @transform_4(%arg0: i32, %arg1: i32) -> (i32, i32) {
    %c0_i32 = arith.constant 0 : i32
    %c0_i32_0 = arith.constant 0 : i32
    %c0_i32_1 = arith.constant 0 : i32
    return %c0_i32, %c0_i32_0 : i32, i32
  }
  func.func @transform_5(%arg0: i32, %arg1: i32) -> (i32, i32) {
    %c0_i32 = arith.constant 0 : i32
    %c0_i32_0 = arith.constant 0 : i32
    %c0_i32_1 = arith.constant 0 : i32
    return %c0_i32, %c0_i32_0 : i32, i32
  }
  func.func @transform_6(%arg0: i32, %arg1: i32) -> (i32, i32) {
    %c0_i32 = arith.constant 0 : i32
    %c0_i32_0 = arith.constant 0 : i32
    %c0_i32_1 = arith.constant 0 : i32
    return %c0_i32, %c0_i32_0 : i32, i32
  }
  func.func @transform_7(%arg0: i32, %arg1: i32) -> (i32, i32) {
    %c0_i32 = arith.constant 0 : i32
    %c0_i32_0 = arith.constant 0 : i32
    %c0_i32_1 = arith.constant 0 : i32
    return %c0_i32, %c0_i32_0 : i32, i32
  }
  func.func @transform_8(%arg0: i32, %arg1: i32) -> (i32, i32) {
    %c0_i32 = arith.constant 0 : i32
    %c0_i32_0 = arith.constant 0 : i32
    %c0_i32_1 = arith.constant 0 : i32
    return %c0_i32, %c0_i32_0 : i32, i32
  }
  func.func @transform_9(%arg0: i32, %arg1: i32) -> (i32, i32) {
    %c0_i32 = arith.constant 0 : i32
    %c0_i32_0 = arith.constant 0 : i32
    %c0_i32_1 = arith.constant 0 : i32
    return %c0_i32, %c0_i32_0 : i32, i32
  }
  func.func @transform_10(%arg0: i32, %arg1: i32) -> (i32, i32, i32) {
    %c0_i32 = arith.constant 0 : i32
    %c0_i32_0 = arith.constant 0 : i32
    return %arg0, %arg1, %c0_i32 : i32, i32, i32
  }
}

</mosaic_0001>

<bundles_post_ra>
// kernel: tpu_custom_call.1
= control target key start
LH: loop header
LB: loop body
LE: loop exit
PB: predicated region body
PF: predicated region fallthrough
CT: control target
= control target key end

     0   :  { %s2657_s0 = inlined_call_operand.vmem [shape: f32[2,8,32], index: 0, kind: input, shape index: {}]   ;;  %s2658_s1 = inlined_call_operand.hbm [shape: bf16[2,8,32], index: 1, kind: input, shape index: {}]   ;;  %s2659_s2 = inlined_call_operand.vmem [shape: bf16[32,32], index: 2, kind: input, shape index: {}]   ;;  %s2660_s3 = inlined_call_operand.vmem [shape: bf16[32,32], index: 3, kind: input, shape index: {}]   ;;  %s2661_s4 = inlined_call_operand.hbm [shape: bf16[32,32], index: 4, kind: input, shape index: {}]   ;;  %s2662_s5 = inlined_call_operand.hbm [shape: bf16[32,32], index: 5, kind: input, shape index: {}]   ;;  %s2663_s6 = inlined_call_operand.hbm [shape: bf16[32,64], index: 6, kind: input, shape index: {}]   ;;  %s2664_s7 = inlined_call_operand.vmem [shape: bf16[64,32], index: 7, kind: input, shape index: {}]   ;;  %s2665_s8 = inlined_call_operand.hbm [shape: f32[9,32], index: 8, kind: input, shape index: {}]   ;;  %s2666_s9 = inlined_call_operand.vmem [shape: f32[1,64], index: 9, kind: input, shape index: {}]   ;;  %s2667_s10 = inlined_call_operand.hbm [shape: f32[2,8,32], index: 10, kind: output, shape index: {}]  }
   0x1   :  { %2675 = sst [smem:[#allocation18_spill]] %s2657_s0 }
   0x2   :  { %2676 = sst [smem:[#allocation19_spill]] %s2661_s4 }
   0x3   :  { %2677 = sst [smem:[#allocation20_spill]] %s2664_s7 }
   0x4   :  { %2678 = sst [smem:[#allocation21_spill]] %s2666_s9 }
   0x5   :  { %2679 = sst [smem:[#allocation22_spill]] %s2667_s10 }
   0x6   :  { %15 = vsyncpa [#allocation5], 0 }
   0x7   :  { %17 = vsyncpa [#allocation5 + $0x1], 0 }
   0x8   :  { %18 = vsyncpa [#allocation8], 0 }
   0x9   :  { %19 = vsyncpa [#allocation11], 0 }
   0xa   :  { %20 = vsyncpa [#allocation6], 0 }
   0xb   :  { %22 = vsyncpa [#allocation6 + $0x1], 0  ;;  %s2199_s13 = smov 0   ;;  %s2201_s14 = smov 0  }
   0xc   :  { %s2203_s15 = smov 0   ;;  %s2205_s16 = smov 0  }
   0xd   :  { %s2207_s17 = smov 0   ;;  %s2209_s18 = smov 0  }
   0xe LB: > { %s2668_s19 = sadd.s32 4294967295, %s2124_s18   ;;  %p1553_p0 = scmp.ge.s32.totalorder %s2124_s18, 1  ;;  %s2124_s18 = sphi %s2209_s18, %s28_s18   ;;  %s2120_s17 = sphi %s2207_s17, %s2705_s17   ;;  %s2116_s16 = sphi %s2205_s16, %s2704_s16   ;;  %s2112_s15 = sphi %s2203_s15, %s2703_s15   ;;  %s2108_s14 = sphi %s2201_s14, %s2702_s14   ;;  %s2104_s13 = sphi %s2199_s13, %s2701_s13  }
   0xf   : > { %p2233_p1 = scmp.eq.s32.totalorder %s2668_s19, 0  ;;  %p295_p2 = scmp.lt.s32.totalorder %s2124_s18, 3 }
  0x10   : > { %s2126_s22 = smov [#allocation7]   ;;  %s2127_s25 = smov [#allocation10]  }
  0x11   : > { %s2680_s20 = scalar_select %p2233_p1, 1, 0 }
  0x12   : > { %p2238_p3 = pnand %p1553_p0, %p295_p2  ;;  %s313_s23 = sshll.u32 %s2126_s22, 4  ;;  %s2242_s23 = int_to_ptr.vmem [resolvable:$true] %s313_s23 }
  0x13   : > { %s339_s26 = sshll.u32 %s2127_s25, 4  ;;  %s2128_s27 = smov [#allocation9]   ;;  %s2253_s26 = int_to_ptr.vmem [resolvable:$true] %s339_s26 }
  0x14   : > { %s2681_s21 = scalar_select %p2238_p3, 1, 0 }
  0x15   : > { %p1761_p4 = pneg %p2238_p3  ;;  %s2255_s28 = sshll.u32 %s2128_s27, 4  ;;  %s327_s28 = int_to_ptr.vmem [resolvable:$true] %s2255_s28 }
  0x16   : > { %s2683_s4 = sld [smem:[#allocation19_spill]] }
  0x17   : > { %p2249_p6 = pnand %p1761_p4, %p2233_p1 }
  0x19   : > { %p2265_p8 = pneg %p2249_p6 }
  0x1c   : > { %s1892_s11 = scalar_lea.hbm %s2683_s4, 256 }
  0x1d   : > { %p1893_p7 = scmp.ne.s32.totalorder %s2683_s4, %s1892_s11  ;;  %p1899_p11 = scmp.lt.u32.totalorder %s1892_s11, %s2683_s4 }
  0x1f   : > { %p1895_p9 = pnand %p2265_p8, %p1893_p7 }
  0x21   : > { %p1896_p10 = pneg %p1895_p9 }
  0x23   : > { %p1901_p12 = pnand %p1899_p11, %p1896_p10 }
  0x25   : > { %1904 = shalt.err (!%p1901_p12)
}
  0x26   : > { %s1905_s29 = scalar_lea.vmem %s2242_s23, 256  ;;  %p1913_p4 = scmp.lt.s32.totalorder %s2242_s23, %s2242_s23 }
  0x27   : > { %p1906_p13 = scmp.ne.s32.totalorder %s2242_s23, %s1905_s29  ;;  %p1914_p5 = scmp.lt.s32.totalorder %s1905_s29, %s1905_s29 }
  0x29   : > { %p1908_p0 = pnand %p1906_p13, %p2265_p8  ;;  %p1915_p7 = por %p1914_p5, %p1913_p4 }
  0x2b   : > { %p1909_p2 = pneg %p1908_p0 }
  0x2d   : > { %p1916_p9 = pnand %p1915_p7, %p1909_p2 }
  0x2f   : > { %1919 = shalt.err (!%p1916_p9)
}
  0x30   : > { %s2129_s30 = smov 64   ;;  %s2130_s11 = smov 4  }
  0x31   : > { %1764 = dma.hbm_to_vmem [thread:$0]  (!%p2249_p6), %s2683_s4, 256, %s2242_s23, [#allocation8], %s2129_s30, %s2129_s30, %s2130_s11  }
  0x32   : > { %s1920_s29 = scalar_lea.hbm %s2663_s6, 256 }
  0x33   : > { %p1921_p5 = scmp.ne.s32.totalorder %s2663_s6, %s1920_s29  ;;  %p1927_p12 = scmp.lt.u32.totalorder %s1920_s29, %s2663_s6 }
  0x35   : > { %p1923_p10 = pnand %p1921_p5, %p2265_p8 }
  0x37   : > { %p1924_p11 = pneg %p1923_p10 }
  0x39   : > { %p1929_p13 = pnand %p1927_p12, %p1924_p11 }
  0x3b   : > { %1932 = shalt.err (!%p1929_p13)
}
  0x3c   : > { %s1933_s23 = scalar_lea.vmem %s2253_s26, 256  ;;  %p1941_p7 = scmp.lt.s32.totalorder %s2253_s26, %s2253_s26 }
  0x3d   : > { %p1934_p0 = scmp.ne.s32.totalorder %s2253_s26, %s1933_s23  ;;  %p1942_p9 = scmp.lt.s32.totalorder %s1933_s23, %s1933_s23 }
  0x3f   : > { %p1936_p2 = pnand %p1934_p0, %p2265_p8  ;;  %p1943_p5 = por %p1942_p9, %p1941_p7 }
  0x41   : > { %p1937_p4 = pneg %p1936_p2 }
  0x43   : > { %p1944_p10 = pnand %p1943_p5, %p1937_p4 }
  0x45   : > { %1947 = shalt.err (!%p1944_p10)
}
  0x46   : > { %1770 = dma.hbm_to_vmem [thread:$0]  (!%p2249_p6), %s2663_s6, 256, %s2253_s26, [#allocation11], %s2129_s30, %s2129_s30, %s2130_s11  }
  0x47   : > { %s1948_s12 = scalar_lea.hbm %s2662_s5, 256 }
  0x48   : > { %p1949_p11 = scmp.ne.s32.totalorder %s2662_s5, %s1948_s12  ;;  %p1955_p0 = scmp.lt.u32.totalorder %s1948_s12, %s2662_s5 }
  0x4a   : > { %p1951_p12 = pnand %p1949_p11, %p2265_p8 }
  0x4c   : > { %p1952_p13 = pneg %p1951_p12 }
  0x4e   : > { %p1957_p2 = pnand %p1955_p0, %p1952_p13 }
  0x50   : > { %1960 = shalt.err (!%p1957_p2)
}
  0x51   : > { %s1961_s23 = scalar_lea.vmem %s327_s28, 256  ;;  %p1969_p5 = scmp.lt.s32.totalorder %s327_s28, %s327_s28 }
  0x52   : > { %p1962_p4 = scmp.ne.s32.totalorder %s327_s28, %s1961_s23  ;;  %p1970_p10 = scmp.lt.s32.totalorder %s1961_s23, %s1961_s23 }
  0x54   : > { %p1964_p7 = pnand %p1962_p4, %p2265_p8  ;;  %p1971_p3 = por %p1970_p10, %p1969_p5 }
  0x56   : > { %p1965_p9 = pneg %p1964_p7 }
  0x58   : > { %p1972_p1 = pnand %p1971_p3, %p1965_p9 }
  0x5a   : > { %1975 = shalt.err (!%p1972_p1)
}
  0x5b   : > { %1767 = dma.hbm_to_vmem [thread:$0]  (!%p2249_p6), %s2662_s5, 256, %s327_s28, [#allocation8], %s2129_s30, %s2129_s30, %s2130_s11  }
  0x5c   : > { %s2131_s7 = smov [#allocation12]   ;;  %s1976_s22 = scalar_lea.hbm %s2665_s8, 256 }
  0x5d   : > { %s355_s9 = sshll.u32 %s2131_s7, 4  ;;  %p1977_p1 = scmp.ne.s32.totalorder %s2665_s8, %s1976_s22  ;;  %s356_s9 = int_to_ptr.vmem [resolvable:$true] %s355_s9 }
  0x5e   : > { %p1983_p12 = scmp.lt.u32.totalorder %s1976_s22, %s2665_s8 }
  0x5f   : > { %p1979_p3 = pnand %p1977_p1, %p2265_p8 }
  0x61   : > { %p1980_p11 = pneg %p1979_p3 }
  0x63   : > { %p1985_p13 = pnand %p1983_p12, %p1980_p11 }
  0x65   : > { %1988 = shalt.err (!%p1985_p13)
}
  0x66   : > { %s1989_s28 = scalar_lea.vmem %s356_s9, 256  ;;  %p1997_p7 = scmp.lt.s32.totalorder %s356_s9, %s356_s9 }
  0x67   : > { %p1990_p0 = scmp.ne.s32.totalorder %s356_s9, %s1989_s28  ;;  %p1998_p9 = scmp.lt.s32.totalorder %s1989_s28, %s1989_s28 }
  0x69   : > { %p1992_p2 = pnand %p1990_p0, %p2265_p8  ;;  %p1999_p5 = por %p1998_p9, %p1997_p7 }
  0x6b   : > { %p1993_p4 = pneg %p1992_p2 }
  0x6d   : > { %p2000_p10 = pnand %p1999_p5, %p1993_p4 }
  0x6f   : > { %2003 = shalt.err (!%p2000_p10)
}
  0x70   : > { %s2132_s30 = smov 128   ;;  %s2133_s19 = smov 8  }
  0x71   : > { %1773 = dma.hbm_to_vmem [thread:$0]  (!%p2249_p6), %s2665_s8, 256, %s356_s9, [#allocation11], %s2132_s30, %s2132_s30, %s2133_s19  }
  0x72   : > { %s1552_s0 = sadd.s32 4294967294, %s2124_s18   ;;  %s40_s7 = sadd.s32 1, %s2120_s17 }
  0x73   : > { %p42_p8 = scmp.ge.s32.totalorder %s40_s7, 2  ;;  %s75_s10 = sadd.s32 1, %s2112_s15 }
  0x74   : > { %p82_p1 = scmp.ne.s32.totalorder %s2112_s15, %s2108_s14  ;;  %p83_p3 = scmp.eq.s32.totalorder %s2124_s18, 0 }
  0x75   : > { %s2707_s7 = smov (%p42_p8, %s40_s7), 0  ;;  %p88_p12 = scmp.ne.s32.totalorder %s2108_s14, %s2104_s13 }
  0x76   : > { %p2363_p11 = por %p83_p3, %p82_p1  ;;  %s72_s24 = ssub.s32 %s2120_s17, %s2707_s7 }
  0x77   : > { %s2686_s9 = sadd.s32 4294967295, %s2124_s18   ;;  %p73_p13 = scmp.eq.s32.totalorder %s72_s24, 0 }
  0x78   : > { %p282_p6 = scmp.eq.s32.totalorder %s2686_s9, 1  ;;  %p2687_p0 = scmp.ne.s32.totalorder %s2680_s20, 0 }
  0x79   : > { %p288_p7 = scmp.eq.s32.totalorder %s1552_s0, 1  ;;  %p1786_p5 = scmp.lt.s32.totalorder %s2124_s18, 2 }
  0x7a   : > { %p2375_p2 = por %p2687_p0, %p88_p12  ;;  %p2379_p4 = por %p282_p6, %p82_p1 }
  0x7b   : > { %s2384_s27 = scalar_select %p73_p13, %s2112_s15, %s75_s10  }
  0x7c   : > { %s2689_s25 = scalar_select %p2379_p4, 1, 0 }
  0x7d   : > { %p2386_p9 = por %p288_p7, %p88_p12  ;;  %s382_s23 = sand.u32 1, %s2112_s15  }
  0x7e   : > { %s1560_s28 = sshll.u32 %s2120_s17, 6  ;;  %s1559_s30 = sshll.u32 %s382_s23, 2 }
  0x7f   : > { %s2690_s29 = scalar_select %p2386_p9, 1, 0 }
  0x80   : > { %s2396_s26 = scalar_lea.hbm %s2658_s1, %s1560_s28  ;;  %s386_s0 = scalar_lea.vmem [#allocation4], %s1559_s30 }
  0x81   : > { %s393_s10 = sshll.u32 %s386_s0, 4  ;;  %p2400_p10 = pnand %p1786_p5, %p2363_p11  ;;  %s2404_s10 = int_to_ptr.vmem [resolvable:$true] %s393_s10 }
  0x82   : > { %s383_s9 = scalar_lea.sflag [#allocation5], %s382_s23  ;;  %s2004_s4 = scalar_lea.hbm %s2396_s26, 64 }
  0x83   : > { %p2005_p8 = scmp.ne.s32.totalorder %s2396_s26, %s2004_s4  ;;  %p2006_p1 = pneg %p2400_p10 }
  0x84   : > { %s2009_s12 = scalar_lea.hbm %s2658_s1, 128  ;;  %p2010_p11 = scmp.lt.u32.totalorder %s2396_s26, %s2658_s1 }
  0x85   : > { %p2007_p3 = pnand %p2006_p1, %p2005_p8  ;;  %p2011_p6 = scmp.lt.u32.totalorder %s2009_s12, %s2004_s4 }
  0x86   : > { %p2013_p0 = scmp.lt.u32.totalorder %s2004_s4, %s2396_s26 }
  0x87   : > { %p2008_p12 = pneg %p2007_p3  ;;  %p2012_p13 = por %p2011_p6, %p2010_p11 }
  0x89   : > { %p2014_p7 = por %p2013_p0, %p2012_p13 }
  0x8b   : > { %p2015_p5 = pnand %p2014_p7, %p2008_p12 }
  0x8d   : > { %2018 = shalt.err (!%p2015_p5)
}
  0x8e   : > { %s2019_s23 = scalar_lea.vmem %s2404_s10, 64  ;;  %s2134_s0 = smov [#allocation4]  }
  0x8f   : > { %p2020_p8 = scmp.ne.s32.totalorder %s2404_s10, %s2019_s23  ;;  %s2024_s28 = sshll.u32 %s2134_s0, 4  ;;  %s2025_s28 = int_to_ptr.vmem [resolvable:$false] %s2024_s28 }
  0x90   : > { %s2026_s30 = scalar_lea.vmem %s2025_s28, 128  ;;  %p2027_p4 = scmp.lt.s32.totalorder %s2404_s10, %s2025_s28 }
  0x91   : > { %p2022_p3 = pnand %p2020_p8, %p2006_p1  ;;  %p2028_p11 = scmp.lt.s32.totalorder %s2026_s30, %s2019_s23 }
  0x93   : > { %p2023_p9 = pneg %p2022_p3  ;;  %p2029_p6 = por %p2028_p11, %p2027_p4 }
  0x95   : > { %p2030_p13 = pnand %p2029_p6, %p2023_p9 }
  0x97   : > { %2033 = shalt.err (!%p2030_p13)
}
  0x98   : > { %1777 = dma.hbm_to_vmem [thread:$0]  (!%p2400_p10), %s2396_s26, 64, %s2404_s10, %s383_s9  }
  0x99   : > { %p2692_p12 = scmp.ne.s32.totalorder %s2681_s21, 0 }
  0x9a   : > { %s2434_s4 = sand.u32 (!%p2692_p12), 1, %s2108_s14  }
  0x9b   : > { %402 = sbr.rel (%p2692_p12) target bundleno = 2694 (0xa86), region = 60  ;;  %s1562_s12 = sshll.u32 (!%p2692_p12), %s2434_s4, 2 }
  0x9c   : > { %s405_s19 = scalar_lea.sflag (!%p2692_p12), [#allocation5], %s2434_s4  ;;  %s408_s11 = scalar_lea.vmem (!%p2692_p12), [#allocation4], %s1562_s12 }
  0xa2   : > { %2087 = dma.done.wait (%p2375_p2), %s405_s19, 64  }
  0xa3   : > { %2089 = vsyncadd (%p2375_p2), %s405_s19, 4294967232  ;;  %p2693_p4 = scmp.ne.s32.totalorder %s2680_s20, 0 }
  0xa5   : > { %2091 = dma.done.wait (%p2693_p4), [#allocation8], 512  }
  0xa6   : > { %2093 = vsyncadd (%p2693_p4), [#allocation8], 4294966784 }
  0xa7   : > { %2095 = dma.done.wait (%p2693_p4), [#allocation11], 512  }
  0xa8   : > { %2097 = vsyncadd (%p2693_p4), [#allocation11], 4294966784  ;;  %v2135_v0 = vmov 0.0   ;;  %vm2136_vm0 = vmmov 0   ;;  %p468_p2 = scmp.lt.s32.totalorder %s2116_s16, 1  ;;  %v1856_v1 = vld [vmem:[%s2660_s3] sm:$0xff]   ;;  %v488_v10 = vlaneseq }
  0xa9   : > { %1641 = vmatprep.subr.bf16.mxu0 %v2135_v0  ;;  %1645 = vmatprep.mubr.msk.bf16.mxu0 %vm2136_vm0, %v2135_v0  ;;  %v1857_v2 = vld [vmem:[%s2660_s3 + $0x8] sm:$0xff]   ;;  %vm504_vm1 = vcmask 261120   ;;  %v1858_v4 = vld [vmem:[%s2659_s2] sm:$0xff]   ;;  %s2694_s30 = sld [smem:[#allocation18_spill]]  ;;  %v1860_v8 = vld [vmem:[#allocation7] sm:$0xff]   ;;  %vm609_vm2 = vcmask 257024  }
  0xaa   : > { %1649 = vmatprep.subr.bf16.mxu1 %v2135_v0  ;;  %1653 = vmatprep.mubr.msk.bf16.mxu1 %vm2136_vm0, %v2135_v0  ;;  %s469_s21 = scalar_select %p468_p2, %s2116_s16, 1  ;;  %v483_v3 = vld [vmem:[%s408_s11] sm:$0xf]  ;;  %v1861_v9 = vld [vmem:[#allocation7 + $0x8] sm:$0xff]   ;;  %v2492_v11 = vshrl.u32 %v488_v10, 7  ;;  %v2495_v13 = vld [vmem:[#allocation12] sm:$0xff] }
  0xab   : > { %1642 = vmatpush3.bf16.msra.mxu0 %v1856_v1  ;;  %v1859_v5 = vld [vmem:[%s2659_s2 + $0x8] sm:$0xff]   ;;  %1650 = vmatpush3.bf16.msra.mxu1 %v1860_v8  ;;  %vm682_vm3 = vcmask 64512   ;;  %s2137_s11 = smov 112   ;;  %s2139_s26 = smov 104   ;;  %vm744_vm4 = vcmask 1043456   ;;  %vm1138_vm5 = vcmask 130048  }
  0xac   : > { %s1568_s24 = sshll.u32 %s469_s21, 3  ;;  %1643 = vmatprep.subr.bf16.mxu0 %v2135_v0  ;;  %1651 = vmatprep.subr.bf16.mxu1 %v2135_v0  ;;  %v490_v12 = vsub.s32 1, %v2492_v11  ;;  %v621_v21 = vsub.s32 0, %v2492_v11  ;;  %s2138_s21 = smov 120   ;;  %v554_v32 = vsub.s32 2, %v2492_v11  ;;  %vm1140_vm6 = vcmask 195584  }
  0xad   : > { %s2140_s20 = smov 8   ;;  %s2141_s10 = smov 16   ;;  %vm1335_vm7 = vcmask 523264  }
  0xae   : > { %v491_v14 = vrot.slane %v2495_v13, %v490_v12  ;;  %v622_v22 = vrot.slane %v2495_v13, %v621_v21  ;;  %v555_v33 = vrot.slane %v2495_v13, %v554_v32  ;;  %s2695_s0 = sld [smem:[#allocation20_spill]]  ;;  %s1405_s22 = scalar_lea.sflag [#allocation6], %s2434_s4 }
  0xaf   : > { %s474_s12 = scalar_lea.vmem %s2694_s30, %s1568_s24  ;;  %1644 = vmatpush3.bf16.msra.mxu0 %v1857_v2  ;;  %1652 = vmatpush3.bf16.msra.mxu1 %v1861_v9  ;;  %s2142_s24 = smov 24  }
  0xb0   : > { %1657 = vmatprep.subr.bf16.mxu0 %v2135_v0  ;;  %v2475_v6 = vld [vmem:[%s474_s12] sm:$0xff]  ;;  %1665 = vmatprep.subr.bf16.mxu1 %v2135_v0  ;;  %s2697_s12 = sld [smem:[#allocation22_spill]]  ;;  %p2698_p10 = scmp.ne.s32.totalorder %s2689_s25, 0 }
  0xb1   : > { %v614_v7 = vpack.c.bf16 %v2475_v6, %v2475_v6 }
  0xb2   : > { %1646 = vmatmul.mubr.msk.bf16.vlgmr.msra.gmra.mrb[0].mxu0 %vm504_vm1, %v483_v3  ;;  %1654 = vmatmul.mubr.msk.bf16.vlgmr.msra.gmra.mrb[0].mxu1 %vm504_vm1, %v483_v3 }
  0xb3   : > { %1658 = vmatpush3.bf16.msra.mxu0 %v1858_v4  ;;  %1661 = vmatprep.mubr.msk.bf16.mxu0 %vm2136_vm0, %v2135_v0 }
  0xb4   : > { %1659 = vmatprep.subr.bf16.mxu0 %v2135_v0  ;;  %1667 = vmatprep.mubr.msk.bf16.mxu1 %vm2136_vm0, %v2135_v0 }
  0xb7   : > { %1660 = vmatpush3.bf16.msra.mxu0 %v1859_v5 }
  0xb8   : > { %1671 = vmatprep.subr.bf16.mxu0 %v2135_v0 }
  0xba   : > { %1662 = vmatmul.mubr.msk.bf16.vlgmr.msra.gmra.mrb[4].mxu0 %vm504_vm1, %v614_v7 }
  0xbb   : > { %1673 = vmatprep.mubr.msk.bf16.mxu0 %vm2136_vm0, %v2135_v0 }
 0x185   : > { %v542_v15 = vpop.f32.mrb[0].mxu0  ;;  %v602_v34 = vpop.f32.mrb[0].mxu1 }
 0x186   : > { %v543_v16 = vadd.f32 %v542_v15, %v491_v14  ;;  %v1647_v17 = vpop.f32.mrb[1].mxu0  ;;  %v603_v35 = vadd.f32 %v602_v34, %v555_v33  ;;  %v1655_v36 = vpop.f32.mrb[1].mxu1 }
 0x187   : > { %v545_v18 = vpop.f32.mrb[2].mxu0  ;;  %v605_v37 = vpop.f32.mrb[2].mxu1 }
 0x188   : > { %v608_v19 = vpack.c.bf16 %v543_v16, %v543_v16  ;;  %v1648_v20 = vpop.f32.mrb[3].mxu0  ;;  %v611_v38 = vpack.c.bf16 %v603_v35, %v603_v35  ;;  %v1656_v39 = vpop.f32.mrb[3].mxu1 }
 0x18a   : > { %610 = vst.msk [vmem:[#allocation2] sm:$0xf] %vm609_vm2, %v608_v19  ;;  %612 = vst.msk [vmem:[#allocation3] sm:$0xf] %vm609_vm2, %v611_v38 }
 0x18d   : > { %v673_v23 = vpop.f32.mrb[4].mxu0 }
 0x18e   : > { %v1663_v24 = vpop.f32.mrb[5].mxu0  ;;  %v674_v26 = vadd.f32 %v673_v23, %v622_v22 }
 0x18f   : > { %v676_v25 = vpop.f32.mrb[6].mxu0 }
 0x190   : > { %v1664_v27 = vpop.f32.mrb[7].mxu0  ;;  %v681_v31 = vpack.c.bf16 %v674_v26, %v674_v26 }
 0x191   : > { %v679_v28 = vld [vmem:[#allocation2] sm:$0xf]  ;;  %v680_v40 = vld [vmem:[#allocation3] sm:$0xf] }
 0x192   : > { %v687_v29 = vsel %vm682_vm3, %v679_v28, 0  ;;  %v1580_v30 = vcombine.low %v679_v28, %v679_v28  ;;  %v746_v41 = vsel %vm744_vm4, %v680_v40, 0  ;;  %v1582_v16 = vcombine.low %v680_v40, %v680_v40 }
 0x193   : > { %1666 = vmatpush3.bf16.xpose.msra.mxu1 %v687_v29  ;;  %1672 = vmatpush3.bf16.msra.mxu0 %v746_v41 }
 0x194   : > { %907 = vrot.lane.b32.xlu1 %v1580_v30, %s2137_s11  ;;  %794 = vrot.lane.b32.xlu0 %v1580_v30, %s2138_s21 }
 0x195   : > { %1677 = vmatprep.subr.bf16.mxu1 %v2135_v0  ;;  %1683 = vmatprep.subr.bf16.mxu0 %v2135_v0 }
 0x198   : > { %905 = vrot.lane.b32.xlu1 %v681_v31, %s2137_s11  ;;  %789 = vrot.lane.b32.xlu0 %v681_v31, %s2138_s21 }
 0x19a   : > { %1668 = vmatmul.mubr.msk.bf16.vlgmr.msra.gmra.mrb[4].mxu1 %vm682_vm3, %v681_v31 }
 0x19b   : > { %1679 = vmatprep.mubr.msk.bf16.mxu1 %vm2136_vm0, %v2135_v0 }
 0x19c   : > { %1015 = vrot.lane.b32.xlu1 %v681_v31, %s2139_s26  ;;  %1017 = vrot.lane.b32.xlu0 %v1580_v30, %s2139_s26 }
 0x206   : > { %v795_v42 = vpop.permute.xlu0 %794  ;;  %v908_v44 = vpop.permute.xlu1 %907 }
 0x207   : > { %v800_v43 = vsel %vm682_vm3, %v795_v42, 0  ;;  %v913_v46 = vsel %vm682_vm3, %v908_v44, 0 }
 0x208   : > { %1678 = vmatpush3.bf16.xpose.msra.mxu1 %v800_v43 }
 0x209   : > { %1689 = vmatprep.subr.bf16.mxu1 %v2135_v0 }
 0x20a   : > { %v790_v45 = vpop.permute.xlu0 %789  ;;  %v906_v48 = vpop.permute.xlu1 %905 }
 0x20e   : > { %v1018_v47 = vpop.permute.xlu0 %1017  ;;  %v1016_v50 = vpop.permute.xlu1 %1015 }
 0x20f   : > { %1680 = vmatmul.mubr.msk.bf16.vlgmr.msra.gmra.mrb[8].mxu1 %vm682_vm3, %v790_v45  ;;  %v1023_v49 = vsel %vm682_vm3, %v1018_v47, 0 }
 0x210   : > { %1690 = vmatpush3.bf16.xpose.msra.mxu1 %v913_v46  ;;  %1691 = vmatprep.mubr.msk.bf16.mxu1 %vm2136_vm0, %v2135_v0 }
 0x211   : > { %1701 = vmatprep.subr.bf16.mxu1 %v2135_v0 }
 0x217   : > { %1692 = vmatmul.mubr.msk.bf16.vlgmr.msra.gmra.mrb[12].mxu1 %vm682_vm3, %v906_v48 }
 0x218   : > { %1702 = vmatpush3.bf16.xpose.msra.mxu1 %v1023_v49  ;;  %1703 = vmatprep.mubr.msk.bf16.mxu1 %vm2136_vm0, %v2135_v0 }
 0x219   : > { %1713 = vmatprep.subr.bf16.mxu1 %v2135_v0 }
 0x21f   : > { %1704 = vmatmul.mubr.msk.bf16.vlgmr.msra.gmra.mrb[16].mxu1 %vm682_vm3, %v1016_v50 }
 0x220   : > { %1717 = vmatprep.mubr.msk.bf16.mxu1 %vm2136_vm0, %v2135_v0 }
 0x26d   : > { %v723_v51 = vpop.f32.mrb[4].mxu1 }
 0x26e   : > { %v1669_v52 = vpop.f32.mrb[5].mxu1  ;;  %v729_v53 = vsel %vm682_vm3, %v723_v51, -inf }
 0x26f   : > { %730 = vmax.xlane.f32.xlu0 %v729_v53  ;;  %v726_v54 = vpop.f32.mrb[6].mxu1 }
 0x270   : > { %v1670_v55 = vpop.f32.mrb[7].mxu1 }
 0x2e2   : > { %v836_v56 = vpop.f32.mrb[8].mxu1 }
 0x2e3   : > { %v1681_v57 = vpop.f32.mrb[9].mxu1  ;;  %v842_v58 = vsel %vm682_vm3, %v836_v56, -inf }
 0x2e4   : > { %843 = vmax.xlane.f32.xlu1 %v842_v58  ;;  %v839_v59 = vpop.f32.mrb[10].mxu1  ;;  %v1864_v58 = vld [vmem:[#allocation9] sm:$0xff]  }
 0x2e5   : > { %v1682_v60 = vpop.f32.mrb[11].mxu1  ;;  %1714 = vmatpush3.bf16.msra.mxu1 %v1864_v58  ;;  %v1595_v58 = vld [vmem:[#allocation12 + $0x8] ss:$0 sm:$0xff] }
 0x2e6   : > { %1715 = vmatprep.subr.bf16.mxu1 %v2135_v0 }
 0x2ea   : > { %v949_v61 = vpop.f32.mrb[12].mxu1 }
 0x2eb   : > { %v1693_v62 = vpop.f32.mrb[13].mxu1  ;;  %v955_v63 = vsel %vm682_vm3, %v949_v61, -inf }
 0x2ec   : > { %956 = vmax.xlane.f32.xlu0 %v955_v63  ;;  %v952_v1 = vpop.f32.mrb[14].mxu1  ;;  %v1865_v63 = vld [vmem:[#allocation9 + $0x8] sm:$0xff]  }
 0x2ed   : > { %v1694_v2 = vpop.f32.mrb[15].mxu1  ;;  %1716 = vmatpush3.bf16.msra.mxu1 %v1865_v63 }
 0x2ee   : > { %1729 = vmatprep.subr.bf16.mxu1 %v2135_v0 }
 0x2f2   : > { %v1059_v3 = vpop.f32.mrb[16].mxu1 }
 0x2f3   : > { %v1705_v4 = vpop.f32.mrb[17].mxu1  ;;  %v1065_v5 = vsel %vm682_vm3, %v1059_v3, -inf }
 0x2f4   : > { %1066 = vmax.xlane.f32.xlu0 %v1065_v5  ;;  %v1062_v7 = vpop.f32.mrb[18].mxu1 }
 0x2f5   : > { %v1706_v8 = vpop.f32.mrb[19].mxu1 }
 0x2fc   : > { %v731_v9 = vpop.xlane.xlu0 %730 }
 0x2fd   : > { %v732_v10 = vsub.f32 %v723_v51, %v731_v9 }
 0x2ff   : > { %v733_v12 = vmul.f32 1.442695, %v732_v10 }
 0x301   : > { %1872 = vpow2.f32 %v733_v12 }
 0x30b   : > { %v1873_v14 = vpop.eup %1872 }
 0x30c   : > { %v735_v15 = vsel %vm682_vm3, %v1873_v14, 0.0 }
 0x30d   : > { %736 = vadd.xlane.f32.xlu1 %v735_v15 }
 0x31e   : > { %857 = vrot.lane.b32.xlu1 %v1582_v16, %s2138_s21 }
 0x371   : > { %v844_v17 = vpop.xlane.xlu1 %843 }
 0x372   : > { %v845_v18 = vsub.f32 %v836_v56, %v844_v17 }
 0x374   : > { %v846_v19 = vmul.f32 1.442695, %v845_v18 }
 0x376   : > { %1874 = vpow2.f32 %v846_v19  ;;  %v1149_v19 = vsub.s32 3, %v2492_v11 }
 0x379   : > { %v957_v20 = vpop.xlane.xlu0 %956 }
 0x37a   : > { %v958_v21 = vsub.f32 %v949_v61, %v957_v20  ;;  %v1150_v20 = vrot.slane %v2495_v13, %v1149_v19 }
 0x37c   : > { %v959_v22 = vmul.f32 1.442695, %v958_v21 }
 0x37e   : > { %1876 = vpow2.f32 %v959_v22 }
 0x380   : > { %v1875_v23 = vpop.eup %1874 }
 0x381   : > { %v1067_v24 = vpop.xlane.xlu0 %1066  ;;  %v848_v25 = vsel %vm682_vm3, %v1875_v23, 0.0 }
 0x382   : > { %v1068_v26 = vsub.f32 %v1059_v3, %v1067_v24  ;;  %849 = vadd.xlane.f32.xlu0 %v848_v25 }
 0x384   : > { %v1069_v27 = vmul.f32 1.442695, %v1068_v26 }
 0x386   : > { %1878 = vpow2.f32 %v1069_v27 }
 0x388   : > { %v1877_v28 = vpop.eup %1876 }
 0x389   : > { %v961_v29 = vsel %vm682_vm3, %v1877_v28, 0.0 }
 0x38a   : > { %962 = vadd.xlane.f32.xlu1 %v961_v29 }
 0x390   : > { %v1879_v30 = vpop.eup %1878 }
 0x391   : > { %v1071_v31 = vsel %vm682_vm3, %v1879_v30, 0.0 }
 0x392   : > { %1072 = vadd.xlane.f32.xlu0 %v1071_v31 }
 0x39a   : > { %v737_v32 = vpop.xlane.xlu1 %736 }
 0x39b   : > { %1880 = vrcp.f32 %v737_v32  ;;  %1077 = vrot.lane.b32.xlu1 %v1582_v16, %s2139_s26 }
 0x39e   : > { %v858_v35 = vpop.permute.xlu1 %857 }
 0x39f   : > { %v863_v37 = vsel %vm744_vm4, %v858_v35, 0  ;;  %v1869_v35 = vld [vmem:[%s2695_s0 + $0x8] sm:$0xff]  }
 0x3a5   : > { %v1881_v33 = vpop.eup %1880 }
 0x3a6   : > { %v739_v34 = vmul.f32 %v1881_v33, %v1873_v14  ;;  %v1866_v33 = vld [vmem:[#allocation10] sm:$0xff]  }
 0x3a8   : > { %967 = vrot.lane.b32.xlu0 %v1582_v16, %s2137_s11  ;;  %v740_v36 = vpack.c.bf16 %v739_v34, %v739_v34  ;;  %v1867_v34 = vld [vmem:[#allocation10 + $0x8] sm:$0xff]  }
 0x3aa   : > { %1674 = vmatmul.mubr.msk.bf16.vlgmr.msra.gmra.mrb[8].mxu0 %vm682_vm3, %v740_v36 }
 0x3ab   : > { %1684 = vmatpush3.bf16.msra.mxu0 %v863_v37  ;;  %1685 = vmatprep.mubr.msk.bf16.mxu0 %vm2136_vm0, %v2135_v0 }
 0x3ac   : > { %1695 = vmatprep.subr.bf16.mxu0 %v2135_v0 }
 0x40f   : > { %v850_v38 = vpop.xlane.xlu0 %849 }
 0x410   : > { %1882 = vrcp.f32 %v850_v38 }
 0x417   : > { %v963_v39 = vpop.xlane.xlu1 %962 }
 0x418   : > { %1884 = vrcp.f32 %v963_v39  ;;  %v1223_v39 = vsub.s32 4, %v2492_v11 }
 0x41a   : > { %v1883_v40 = vpop.eup %1882 }
 0x41b   : > { %v852_v41 = vmul.f32 %v1883_v40, %v1875_v23  ;;  %v1078_v48 = vpop.permute.xlu1 %1077  ;;  %v1228_v40 = vsub.s32 5, %v2492_v11 }
 0x41c   : > { %v1083_v50 = vsel %vm744_vm4, %v1078_v48, 0  ;;  %v1870_v48 = vld [vmem:[%s2695_s0 + $0x10] sm:$0xff]  }
 0x41d   : > { %v853_v42 = vpack.c.bf16 %v852_v41, %v852_v41  ;;  %v1224_v41 = vrot.slane %v2495_v13, %v1223_v39 }
 0x41f   : > { %1686 = vmatmul.mubr.msk.bf16.vlgmr.msra.gmra.mrb[12].mxu0 %vm682_vm3, %v853_v42  ;;  %v1073_v43 = vpop.xlane.xlu0 %1072 }
 0x420   : > { %1886 = vrcp.f32 %v1073_v43  ;;  %1697 = vmatprep.mubr.msk.bf16.mxu0 %vm2136_vm0, %v2135_v0 }
 0x422   : > { %v1885_v44 = vpop.eup %1884 }
 0x423   : > { %v965_v45 = vmul.f32 %v1885_v44, %v1877_v28  ;;  %v968_v46 = vpop.permute.xlu0 %967  ;;  %v1229_v44 = vrot.slane %v2495_v13, %v1228_v40 }
 0x424   : > { %v973_v47 = vsel %vm744_vm4, %v968_v46, 0 }
 0x425   : > { %1696 = vmatpush3.bf16.msra.mxu0 %v973_v47  ;;  %v966_v49 = vpack.c.bf16 %v965_v45, %v965_v45 }
 0x426   : > { %1707 = vmatprep.subr.bf16.mxu0 %v2135_v0 }
 0x428   : > { %1698 = vmatmul.mubr.msk.bf16.vlgmr.msra.gmra.mrb[16].mxu0 %vm682_vm3, %v966_v49  ;;  %v1871_v49 = vld [vmem:[%s2695_s0 + $0x18] sm:$0xff]  }
 0x429   : > { %1708 = vmatpush3.bf16.msra.mxu0 %v1083_v50  ;;  %1709 = vmatprep.mubr.msk.bf16.mxu0 %vm2136_vm0, %v2135_v0 }
 0x42a   : > { %v1887_v51 = vpop.eup %1886  ;;  %1721 = vmatprep.subr.bf16.mxu0 %v2135_v0 }
 0x42b   : > { %v1075_v52 = vmul.f32 %v1887_v51, %v1879_v30 }
 0x42d   : > { %v1076_v53 = vpack.c.bf16 %v1075_v52, %v1075_v52 }
 0x430   : > { %1710 = vmatmul.mubr.msk.bf16.vlgmr.msra.gmra.mrb[20].mxu0 %vm682_vm3, %v1076_v53 }
 0x431   : > { %1725 = vmatprep.mubr.msk.bf16.mxu0 %vm2136_vm0, %v2135_v0  ;;  %1722 = vmatpush3.bf16.msra.mxu0 %v1866_v33 }
 0x432   : > { %1723 = vmatprep.subr.bf16.mxu0 %v2135_v0 }
 0x435   : > { %1724 = vmatpush3.bf16.msra.mxu0 %v1867_v34 }
 0x47d   : > { %v782_v54 = vpop.f32.mrb[8].mxu0 }
 0x47e   : > { %v1675_v55 = vpop.f32.mrb[9].mxu0 }
 0x47f   : > { %v785_v56 = vpop.f32.mrb[10].mxu0 }
 0x480   : > { %v1676_v57 = vpop.f32.mrb[11].mxu0 }
 0x4f2   : > { %v899_v59 = vpop.f32.mrb[12].mxu0 }
 0x4f3   : > { %1126 = vrot.lane.b32.xlu1 %v899_v59, %s2140_s20  ;;  %v1687_v60 = vpop.f32.mrb[13].mxu0  ;;  %s2696_s20 = sld [smem:[#allocation21_spill]] }
 0x4f4   : > { %v902_v61 = vpop.f32.mrb[14].mxu0 }
 0x4f5   : > { %v1688_v62 = vpop.f32.mrb[15].mxu0 }
 0x4f9   : > { %v1591_v50 = vld [vmem:[%s2696_s20] ss:$0 sm:$0xff] }
 0x4fb   : > { %v1009_v1 = vpop.f32.mrb[16].mxu0 }
 0x4fc   : > { %1130 = vrot.lane.b32.xlu0 %v1009_v1, %s2141_s10  ;;  %v1699_v2 = vpop.f32.mrb[17].mxu0  ;;  %s1567_s10 = sshll.u32 %s2434_s4, 3 }
 0x4fd   : > { %v1012_v3 = vpop.f32.mrb[18].mxu0  ;;  %s467_s9 = scalar_lea.vmem [#allocation13], %s1567_s10 }
 0x4fe   : > { %v1700_v4 = vpop.f32.mrb[19].mxu0  ;;  %s1419_s23 = sshll.u32 %s467_s9, 4  ;;  %s2609_s23 = int_to_ptr.vmem [resolvable:$true] %s1419_s23 }
 0x4ff   : > { %s2034_s11 = scalar_lea.vmem %s2609_s23, 128 }
 0x500   : > { %p2035_p9 = scmp.ne.s32.totalorder %s2609_s23, %s2034_s11 }
 0x502   : > { %p2036_p1 = pnand %p2035_p9, %p2698_p10 }
 0x503   : > { %v1119_v5 = vpop.f32.mrb[20].mxu0 }
 0x504   : > { %1134 = vrot.lane.b32.xlu1 %v1119_v5, %s2142_s24  ;;  %v1711_v7 = vpop.f32.mrb[21].mxu0  ;;  %s1602_s24 = sshll.u32 %s2116_s16, 7  ;;  %p2037_p0 = pneg %p2036_p1 }
 0x505   : > { %v1122_v8 = vpop.f32.mrb[22].mxu0  ;;  %s2607_s19 = scalar_lea.hbm %s2697_s12, %s1602_s24  ;;  %s2143_s16 = smov [#allocation13]  }
 0x506   : > { %v1712_v9 = vpop.f32.mrb[23].mxu0  ;;  %s2038_s21 = sshll.u32 %s2143_s16, 4  ;;  %s2039_s21 = int_to_ptr.vmem [resolvable:$false] %s2038_s21 }
 0x507   : > { %s2040_s26 = scalar_lea.vmem %s2039_s21, 256  ;;  %p2041_p7 = scmp.lt.s32.totalorder %s2609_s23, %s2039_s21 }
 0x508   : > { %p2042_p5 = scmp.lt.s32.totalorder %s2040_s26, %s2034_s11 }
 0x50a   : > { %p2043_p8 = por %p2042_p5, %p2041_p7 }
 0x50c   : > { %p2044_p3 = pnand %p2043_p8, %p2037_p0 }
 0x565   : > { %v1127_v10 = vpop.permute.xlu1 %1126 }
 0x566   : > { %v1137_v14 = vsel %vm682_vm3, %v782_v54, %v1127_v10 }
 0x56e   : > { %v1131_v12 = vpop.permute.xlu0 %1130 }
 0x56f   : > { %v1139_v15 = vsel %vm1138_vm5, %v1137_v14, %v1131_v12  ;;  %v1395_v12 = vsub.s32 6, %v2492_v11  ;;  %v1400_v14 = vsub.s32 7, %v2492_v11 }
 0x576   : > { %v1135_v16 = vpop.permute.xlu1 %1134 }
 0x577   : > { %v1141_v17 = vsel %vm1140_vm6, %v1139_v15, %v1135_v16  ;;  %v1396_v15 = vrot.slane %v2495_v13, %v1395_v12 }
 0x578   : > { %v1142_v18 = vpack.c.bf16 %v1141_v17, %v1141_v17 }
 0x57a   : > { %1718 = vmatmul.mubr.msk.bf16.vlgmr.msra.gmra.mrb[20].mxu1 %vm504_vm1, %v1142_v18  ;;  %v1401_v18 = vrot.slane %v2495_v13, %v1400_v14 }
 0x57b   : > { %1737 = vmatprep.mubr.msk.bf16.mxu1 %vm2136_vm0, %v2135_v0 }
 0x64d   : > { %v1200_v21 = vpop.f32.mrb[20].mxu1 }
 0x64e   : > { %v1201_v22 = vadd.f32 %v1200_v21, %v1150_v20  ;;  %v1719_v23 = vpop.f32.mrb[21].mxu1 }
 0x64f   : > { %v1203_v24 = vpop.f32.mrb[22].mxu1 }
 0x650   : > { %v1720_v25 = vpop.f32.mrb[23].mxu1  ;;  %v1206_v26 = vadd.f32 %v1201_v22, %v2475_v6  ;;  %v1868_v6 = vld [vmem:[%s2695_s0] sm:$0xff]  }
 0x651   : > { %1730 = vmatpush3.bf16.msra.mxu1 %v1868_v6 }
 0x652   : > { %v1207_v27 = vsel %vm504_vm1, %v1206_v26, 0.0  ;;  %1731 = vmatprep.subr.bf16.mxu1 %v2135_v0 }
 0x653   : > { %1208 = vadd.xlane.f32.xlu0 %v1207_v27 }
 0x655   : > { %1732 = vmatpush3.bf16.msra.mxu1 %v1869_v35 }
 0x656   : > { %1733 = vmatprep.subr.bf16.mxu1 %v2135_v0 }
 0x659   : > { %1734 = vmatpush3.bf16.msra.mxu1 %v1870_v48 }
 0x65a   : > { %1735 = vmatprep.subr.bf16.mxu1 %v2135_v0 }
 0x65d   : > { %1736 = vmatpush3.bf16.msra.mxu1 %v1871_v49 }
 0x6e0   : > { %v1209_v28 = vpop.xlane.xlu0 %1208 }
 0x6e1   : > { %v1211_v29 = vmul.f32 0.03125, %v1209_v28 }
 0x6e3   : > { %v1212_v30 = vsub.f32 %v1206_v26, %v1211_v29 }
 0x6e5   : > { %v1213_v31 = vmul.f32 %v1212_v30, %v1212_v30 }
 0x6e7   : > { %v1214_v32 = vsel %vm504_vm1, %v1213_v31, 0.0 }
 0x6e8   : > { %1215 = vadd.xlane.f32.xlu1 %v1214_v32 }
 0x775   : > { %v1216_v36 = vpop.xlane.xlu1 %1215 }
 0x776   : > { %v1217_v37 = vmul.f32 0.03125, %v1216_v36 }
 0x778   : > { %v1218_v38 = vadd.f32 1e-05, %v1217_v37 }
 0x77a   : > { %1888 = vrsqrt.f32 %v1218_v38 }
 0x784   : > { %v1889_v42 = vpop.eup %1888 }
 0x785   : > { %v1220_v43 = vmul.f32 %v1889_v42, %v1212_v30 }
 0x787   : > { %v1225_v45 = vmul.f32 %v1224_v41, %v1220_v43 }
 0x789   : > { %v1230_v46 = vadd.f32 %v1229_v44, %v1225_v45 }
 0x78b   : > { %v1231_v47 = vpack.c.bf16 %v1230_v46, %v1230_v46 }
 0x78d   : > { %1726 = vmatmul.mubr.msk.bf16.vlgmr.msra.gmra.mrb[24].mxu0 %vm504_vm1, %v1231_v47 }
 0x860   : > { %v1291_v51 = vpop.f32.mrb[24].mxu0 }
 0x861   : > { %v1292_v52 = vadd.f32 %v1591_v50, %v1291_v51  ;;  %v1727_v53 = vpop.f32.mrb[25].mxu0 }
 0x862   : > { %v1294_v54 = vpop.f32.mrb[26].mxu0 }
 0x863   : > { %v1297_v55 = vmax.f32 %v1292_v52, 0.0  ;;  %v1728_v56 = vpop.f32.mrb[27].mxu0 }
 0x865   : > { %v1298_v57 = vpack.c.bf16 %v1297_v55, %v1297_v55 }
 0x867   : > { %1738 = vmatmul.mubr.msk.bf16.vlgmr.msra.gmra.mrb[24].mxu1 %vm1335_vm7, %v1298_v57 }
 0x93a   : > { %v1373_v0 = vpop.f32.mrb[24].mxu1 }
 0x93b   : > { %v1374_v59 = vadd.f32 %v1595_v58, %v1373_v0  ;;  %v1739_v60 = vpop.f32.mrb[25].mxu1 }
 0x93c   : > { %v1376_v61 = vpop.f32.mrb[26].mxu1 }
 0x93d   : > { %v1740_v62 = vpop.f32.mrb[27].mxu1  ;;  %v1379_v63 = vadd.f32 %v1374_v59, %v1230_v46 }
 0x93f   : > { %v1380_v1 = vsel %vm504_vm1, %v1379_v63, 0.0 }
 0x940   : > { %1381 = vadd.xlane.f32.xlu0 %v1380_v1 }
 0x9cd   : > { %v1382_v2 = vpop.xlane.xlu0 %1381 }
 0x9ce   : > { %v1383_v3 = vmul.f32 0.03125, %v1382_v2 }
 0x9d0   : > { %v1384_v4 = vsub.f32 %v1379_v63, %v1383_v3 }
 0x9d2   : > { %v1385_v5 = vmul.f32 %v1384_v4, %v1384_v4 }
 0x9d4   : > { %v1386_v7 = vsel %vm504_vm1, %v1385_v5, 0.0 }
 0x9d5   : > { %1387 = vadd.xlane.f32.xlu0 %v1386_v7 }
 0xa62   : > { %v1388_v8 = vpop.xlane.xlu0 %1387 }
 0xa63   : > { %v1389_v9 = vmul.f32 0.03125, %v1388_v8 }
 0xa65   : > { %v1390_v10 = vadd.f32 1e-05, %v1389_v9 }
 0xa67   : > { %1890 = vrsqrt.f32 %v1390_v10 }
 0xa71   : > { %v1891_v16 = vpop.eup %1890 }
 0xa72   : > { %v1392_v17 = vmul.f32 %v1891_v16, %v1384_v4 }
 0xa74   : > { %v1397_v19 = vmul.f32 %v1396_v15, %v1392_v17 }
 0xa76   : > { %v1402_v20 = vadd.f32 %v1401_v18, %v1397_v19 }
 0xa78   : > { %1403 = vst.msk [vmem:[%s467_s9] sm:$0xff] %vm504_vm1, %v1402_v20 }
 0xa79   : > { %2047 = shalt.err (!%p2044_p3)
}
 0xa7a   : > { %s2048_s4 = scalar_lea.hbm %s2607_s19, 128  ;;  %s2052_s24 = scalar_lea.hbm %s2697_s12, 256 }
 0xa7b   : > { %p2049_p11 = scmp.ne.s32.totalorder %s2607_s19, %s2048_s4  ;;  %p2053_p12 = scmp.lt.u32.totalorder %s2607_s19, %s2697_s12 }
 0xa7c   : > { %p2054_p4 = scmp.lt.u32.totalorder %s2052_s24, %s2048_s4  ;;  %p2056_p9 = scmp.lt.u32.totalorder %s2048_s4, %s2607_s19 }
 0xa7d   : > { %p2050_p6 = pnand %p2049_p11, %p2698_p10 }
 0xa7e   : > { %p2055_p2 = por %p2054_p4, %p2053_p12 }
 0xa7f   : > { %p2051_p13 = pneg %p2050_p6 }
 0xa80   : > { %p2057_p1 = por %p2056_p9, %p2055_p2 }
 0xa82   : > { %p2058_p0 = pnand %p2057_p1, %p2051_p13 }
 0xa84   : > { %2061 = shalt.err (!%p2058_p0)
}
 0xa85   : > { %1759 = dma.vmem_to_hbm [thread:$0]  (%p2698_p10), %s2609_s23, 128, %s2607_s19, %s1405_s22  }
 0xa86 PF: > { %s1431_s30 = sand.u32 1, %s2104_s13   ;;  %p2699_p7 = scmp.ne.s32.totalorder %s2690_s29, 0 }
 0xa87   : > { %p2700_p5 = scmp.ge.s32.totalorder %s2124_s18, 2  ;;  %s1432_s11 = scalar_lea.sflag [#allocation6], %s1431_s30 }
 0xa89   : > { %p1779_p8 = pnand %p2700_p5, %p2699_p7 }
 0xa8b   : > { %2099 = dma.done.wait (!%p1779_p8), %s1432_s11, 128  }
 0xa8c   : > { %2101 = vsyncadd (!%p1779_p8), %s1432_s11, 4294967168  ;;  %s28_s18 = sadd.s32 1, %s2124_s18   ;;  %s2701_s13 = smov %s2108_s14 }
 0xa8d   : > { %p25_p3 = scmp.ge.s32.totalorder %s28_s18, 4   ;;  %s2702_s14 = smov %s2112_s15 }
 0xa8e   : > { %s2703_s15 = smov %s2384_s27  ;;  %s2704_s16 = smov %s2120_s17 }
 0xa8f   : > { %s2705_s17 = smov %s2707_s7  ;;  %27 = sbr.rel (!%p25_p3) target bundleno = 14 (0xe), region = 128 }
 0xa96   :  { %1437 = vsyncpa [#allocation5], 1 }
 0xa97   :  { %1439 = vsyncpa [#allocation5 + $0x1], 1 }
 0xa98   :  { %1440 = vsyncpa [#allocation8], 1 }
 0xa99   :  { %1441 = vsyncpa [#allocation11], 1 }
 0xa9a   :  { %1442 = vsyncpa [#allocation6], 1 }
 0xa9b   :  { %1444 = vsyncpa [#allocation6 + $0x1], 1 }

// kernel: tpu_custom_call.1
= control target key start
LH: loop header
LB: loop body
LE: loop exit
PB: predicated region body
PF: predicated region fallthrough
CT: control target
= control target key end

     0   :  { %s2657_s0 = inlined_call_operand.vmem [shape: f32[2,8,32], index: 0, kind: input, shape index: {}]   ;;  %s2658_s1 = inlined_call_operand.hbm [shape: bf16[2,8,32], index: 1, kind: input, shape index: {}]   ;;  %s2659_s2 = inlined_call_operand.vmem [shape: bf16[32,32], index: 2, kind: input, shape index: {}]   ;;  %s2660_s3 = inlined_call_operand.vmem [shape: bf16[32,32], index: 3, kind: input, shape index: {}]   ;;  %s2661_s4 = inlined_call_operand.hbm [shape: bf16[32,32], index: 4, kind: input, shape index: {}]   ;;  %s2662_s5 = inlined_call_operand.hbm [shape: bf16[32,32], index: 5, kind: input, shape index: {}]   ;;  %s2663_s6 = inlined_call_operand.hbm [shape: bf16[32,64], index: 6, kind: input, shape index: {}]   ;;  %s2664_s7 = inlined_call_operand.vmem [shape: bf16[64,32], index: 7, kind: input, shape index: {}]   ;;  %s2665_s8 = inlined_call_operand.hbm [shape: f32[9,32], index: 8, kind: input, shape index: {}]   ;;  %s2666_s9 = inlined_call_operand.vmem [shape: f32[1,64], index: 9, kind: input, shape index: {}]   ;;  %s2667_s10 = inlined_call_operand.hbm [shape: f32[2,8,32], index: 10, kind: output, shape index: {}]  }
   0x1   :  { %2675 = sst [smem:[#allocation18_spill]] %s2657_s0 }
   0x2   :  { %2676 = sst [smem:[#allocation19_spill]] %s2661_s4 }
   0x3   :  { %2677 = sst [smem:[#allocation20_spill]] %s2664_s7 }
   0x4   :  { %2678 = sst [smem:[#allocation21_spill]] %s2666_s9 }
   0x5   :  { %2679 = sst [smem:[#allocation22_spill]] %s2667_s10 }
   0x6   :  { %15 = vsyncpa [#allocation5], 0 }
   0x7   :  { %17 = vsyncpa [#allocation5 + $0x1], 0 }
   0x8   :  { %18 = vsyncpa [#allocation8], 0 }
   0x9   :  { %19 = vsyncpa [#allocation11], 0 }
   0xa   :  { %20 = vsyncpa [#allocation6], 0 }
   0xb   :  { %22 = vsyncpa [#allocation6 + $0x1], 0  ;;  %s2199_s13 = smov 0   ;;  %s2201_s14 = smov 0  }
   0xc   :  { %s2203_s15 = smov 0   ;;  %s2205_s16 = smov 0  }
   0xd   :  { %s2207_s17 = smov 0   ;;  %s2209_s18 = smov 0  }
   0xe LB: > { %s2668_s19 = sadd.s32 4294967295, %s2124_s18   ;;  %p1553_p0 = scmp.ge.s32.totalorder %s2124_s18, 1  ;;  %s2124_s18 = sphi %s2209_s18, %s28_s18   ;;  %s2120_s17 = sphi %s2207_s17, %s2705_s17   ;;  %s2116_s16 = sphi %s2205_s16, %s2704_s16   ;;  %s2112_s15 = sphi %s2203_s15, %s2703_s15   ;;  %s2108_s14 = sphi %s2201_s14, %s2702_s14   ;;  %s2104_s13 = sphi %s2199_s13, %s2701_s13  }
   0xf   : > { %p2233_p1 = scmp.eq.s32.totalorder %s2668_s19, 0  ;;  %p295_p2 = scmp.lt.s32.totalorder %s2124_s18, 3 }
  0x10   : > { %s2126_s22 = smov [#allocation7]   ;;  %s2127_s25 = smov [#allocation10]  }
  0x11   : > { %s2680_s20 = scalar_select %p2233_p1, 1, 0 }
  0x12   : > { %p2238_p3 = pnand %p1553_p0, %p295_p2  ;;  %s313_s23 = sshll.u32 %s2126_s22, 4  ;;  %s2242_s23 = int_to_ptr.vmem [resolvable:$true] %s313_s23 }
  0x13   : > { %s339_s26 = sshll.u32 %s2127_s25, 4  ;;  %s2128_s27 = smov [#allocation9]   ;;  %s2253_s26 = int_to_ptr.vmem [resolvable:$true] %s339_s26 }
  0x14   : > { %s2681_s21 = scalar_select %p2238_p3, 1, 0 }
  0x15   : > { %p1761_p4 = pneg %p2238_p3  ;;  %s2255_s28 = sshll.u32 %s2128_s27, 4  ;;  %s327_s28 = int_to_ptr.vmem [resolvable:$true] %s2255_s28 }
  0x16   : > { %s2683_s4 = sld [smem:[#allocation19_spill]] }
  0x17   : > { %p2249_p6 = pnand %p1761_p4, %p2233_p1 }
  0x19   : > { %p2265_p8 = pneg %p2249_p6 }
  0x1c   : > { %s1892_s11 = scalar_lea.hbm %s2683_s4, 256 }
  0x1d   : > { %p1893_p7 = scmp.ne.s32.totalorder %s2683_s4, %s1892_s11  ;;  %p1899_p11 = scmp.lt.u32.totalorder %s1892_s11, %s2683_s4 }
  0x1f   : > { %p1895_p9 = pnand %p2265_p8, %p1893_p7 }
  0x21   : > { %p1896_p10 = pneg %p1895_p9 }
  0x23   : > { %p1901_p12 = pnand %p1899_p11, %p1896_p10 }
  0x25   : > { %1904 = shalt.err (!%p1901_p12)
}
  0x26   : > { %s1905_s29 = scalar_lea.vmem %s2242_s23, 256  ;;  %p1913_p4 = scmp.lt.s32.totalorder %s2242_s23, %s2242_s23 }
  0x27   : > { %p1906_p13 = scmp.ne.s32.totalorder %s2242_s23, %s1905_s29  ;;  %p1914_p5 = scmp.lt.s32.totalorder %s1905_s29, %s1905_s29 }
  0x29   : > { %p1908_p0 = pnand %p1906_p13, %p2265_p8  ;;  %p1915_p7 = por %p1914_p5, %p1913_p4 }
  0x2b   : > { %p1909_p2 = pneg %p1908_p0 }
  0x2d   : > { %p1916_p9 = pnand %p1915_p7, %p1909_p2 }
  0x2f   : > { %1919 = shalt.err (!%p1916_p9)
}
  0x30   : > { %s2129_s30 = smov 64   ;;  %s2130_s11 = smov 4  }
  0x31   : > { %1764 = dma.hbm_to_vmem [thread:$0]  (!%p2249_p6), %s2683_s4, 256, %s2242_s23, [#allocation8], %s2129_s30, %s2129_s30, %s2130_s11  }
  0x32   : > { %s1920_s29 = scalar_lea.hbm %s2663_s6, 256 }
  0x33   : > { %p1921_p5 = scmp.ne.s32.totalorder %s2663_s6, %s1920_s29  ;;  %p1927_p12 = scmp.lt.u32.totalorder %s1920_s29, %s2663_s6 }
  0x35   : > { %p1923_p10 = pnand %p1921_p5, %p2265_p8 }
  0x37   : > { %p1924_p11 = pneg %p1923_p10 }
  0x39   : > { %p1929_p13 = pnand %p1927_p12, %p1924_p11 }
  0x3b   : > { %1932 = shalt.err (!%p1929_p13)
}
  0x3c   : > { %s1933_s23 = scalar_lea.vmem %s2253_s26, 256  ;;  %p1941_p7 = scmp.lt.s32.totalorder %s2253_s26, %s2253_s26 }
  0x3d   : > { %p1934_p0 = scmp.ne.s32.totalorder %s2253_s26, %s1933_s23  ;;  %p1942_p9 = scmp.lt.s32.totalorder %s1933_s23, %s1933_s23 }
  0x3f   : > { %p1936_p2 = pnand %p1934_p0, %p2265_p8  ;;  %p1943_p5 = por %p1942_p9, %p1941_p7 }
  0x41   : > { %p1937_p4 = pneg %p1936_p2 }
  0x43   : > { %p1944_p10 = pnand %p1943_p5, %p1937_p4 }
  0x45   : > { %1947 = shalt.err (!%p1944_p10)
}
  0x46   : > { %1770 = dma.hbm_to_vmem [thread:$0]  (!%p2249_p6), %s2663_s6, 256, %s2253_s26, [#allocation11], %s2129_s30, %s2129_s30, %s2130_s11  }
  0x47   : > { %s1948_s12 = scalar_lea.hbm %s2662_s5, 256 }
  0x48   : > { %p1949_p11 = scmp.ne.s32.totalorder %s2662_s5, %s1948_s12  ;;  %p1955_p0 = scmp.lt.u32.totalorder %s1948_s12, %s2662_s5 }
  0x4a   : > { %p1951_p12 = pnand %p1949_p11, %p2265_p8 }
  0x4c   : > { %p1952_p13 = pneg %p1951_p12 }
  0x4e   : > { %p1957_p2 = pnand %p1955_p0, %p1952_p13 }
  0x50   : > { %1960 = shalt.err (!%p1957_p2)
}
  0x51   : > { %s1961_s23 = scalar_lea.vmem %s327_s28, 256  ;;  %p1969_p5 = scmp.lt.s32.totalorder %s327_s28, %s327_s28 }
  0x52   : > { %p1962_p4 = scmp.ne.s32.totalorder %s327_s28, %s1961_s23  ;;  %p1970_p10 = scmp.lt.s32.totalorder %s1961_s23, %s1961_s23 }
  0x54   : > { %p1964_p7 = pnand %p1962_p4, %p2265_p8  ;;  %p1971_p3 = por %p1970_p10, %p1969_p5 }
  0x56   : > { %p1965_p9 = pneg %p1964_p7 }
  0x58   : > { %p1972_p1 = pnand %p1971_p3, %p1965_p9 }
  0x5a   : > { %1975 = shalt.err (!%p1972_p1)
}
  0x5b   : > { %1767 = dma.hbm_to_vmem [thread:$0]  (!%p2249_p6), %s2662_s5, 256, %s327_s28, [#allocation8], %s2129_s30, %s2129_s30, %s2130_s11  }
  0x5c   : > { %s2131_s7 = smov [#allocation12]   ;;  %s1976_s22 = scalar_lea.hbm %s2665_s8, 256 }
  0x5d   : > { %s355_s9 = sshll.u32 %s2131_s7, 4  ;;  %p1977_p1 = scmp.ne.s32.totalorder %s2665_s8, %s1976_s22  ;;  %s356_s9 = int_to_ptr.vmem [resolvable:$true] %s355_s9 }
  0x5e   : > { %p1983_p12 = scmp.lt.u32.totalorder %s1976_s22, %s2665_s8 }
  0x5f   : > { %p1979_p3 = pnand %p1977_p1, %p2265_p8 }
  0x61   : > { %p1980_p11 = pneg %p1979_p3 }
  0x63   : > { %p1985_p13 = pnand %p1983_p12, %p1980_p11 }
  0x65   : > { %1988 = shalt.err (!%p1985_p13)
}
  0x66   : > { %s1989_s28 = scalar_lea.vmem %s356_s9, 256  ;;  %p1997_p7 = scmp.lt.s32.totalorder %s356_s9, %s356_s9 }
  0x67   : > { %p1990_p0 = scmp.ne.s32.totalorder %s356_s9, %s1989_s28  ;;  %p1998_p9 = scmp.lt.s32.totalorder %s1989_s28, %s1989_s28 }
  0x69   : > { %p1992_p2 = pnand %p1990_p0, %p2265_p8  ;;  %p1999_p5 = por %p1998_p9, %p1997_p7 }
  0x6b   : > { %p1993_p4 = pneg %p1992_p2 }
  0x6d   : > { %p2000_p10 = pnand %p1999_p5, %p1993_p4 }
  0x6f   : > { %2003 = shalt.err (!%p2000_p10)
}
  0x70   : > { %s2132_s30 = smov 128   ;;  %s2133_s19 = smov 8  }
  0x71   : > { %1773 = dma.hbm_to_vmem [thread:$0]  (!%p2249_p6), %s2665_s8, 256, %s356_s9, [#allocation11], %s2132_s30, %s2132_s30, %s2133_s19  }
  0x72   : > { %s1552_s0 = sadd.s32 4294967294, %s2124_s18   ;;  %s40_s7 = sadd.s32 1, %s2120_s17 }
  0x73   : > { %p42_p8 = scmp.ge.s32.totalorder %s40_s7, 2  ;;  %s75_s10 = sadd.s32 1, %s2112_s15 }
  0x74   : > { %p82_p1 = scmp.ne.s32.totalorder %s2112_s15, %s2108_s14  ;;  %p83_p3 = scmp.eq.s32.totalorder %s2124_s18, 0 }
  0x75   : > { %s2707_s7 = smov (%p42_p8, %s40_s7), 0  ;;  %p88_p12 = scmp.ne.s32.totalorder %s2108_s14, %s2104_s13 }
  0x76   : > { %p2363_p11 = por %p83_p3, %p82_p1  ;;  %s72_s24 = ssub.s32 %s2120_s17, %s2707_s7 }
  0x77   : > { %s2686_s9 = sadd.s32 4294967295, %s2124_s18   ;;  %p73_p13 = scmp.eq.s32.totalorder %s72_s24, 0 }
  0x78   : > { %p282_p6 = scmp.eq.s32.totalorder %s2686_s9, 1  ;;  %p2687_p0 = scmp.ne.s32.totalorder %s2680_s20, 0 }
  0x79   : > { %p288_p7 = scmp.eq.s32.totalorder %s1552_s0, 1  ;;  %p1786_p5 = scmp.lt.s32.totalorder %s2124_s18, 2 }
  0x7a   : > { %p2375_p2 = por %p2687_p0, %p88_p12  ;;  %p2379_p4 = por %p282_p6, %p82_p1 }
  0x7b   : > { %s2384_s27 = scalar_select %p73_p13, %s2112_s15, %s75_s10  }
  0x7c   : > { %s2689_s25 = scalar_select %p2379_p4, 1, 0 }
  0x7d   : > { %p2386_p9 = por %p288_p7, %p88_p12  ;;  %s382_s23 = sand.u32 1, %s2112_s15  }
  0x7e   : > { %s1560_s28 = sshll.u32 %s2120_s17, 6  ;;  %s1559_s30 = sshll.u32 %s382_s23, 2 }
  0x7f   : > { %s2690_s29 = scalar_select %p2386_p9, 1, 0 }
  0x80   : > { %s2396_s26 = scalar_lea.hbm %s2658_s1, %s1560_s28  ;;  %s386_s0 = scalar_lea.vmem [#allocation4], %s1559_s30 }
  0x81   : > { %s393_s10 = sshll.u32 %s386_s0, 4  ;;  %p2400_p10 = pnand %p1786_p5, %p2363_p11  ;;  %s2404_s10 = int_to_ptr.vmem [resolvable:$true] %s393_s10 }
  0x82   : > { %s383_s9 = scalar_lea.sflag [#allocation5], %s382_s23  ;;  %s2004_s4 = scalar_lea.hbm %s2396_s26, 64 }
  0x83   : > { %p2005_p8 = scmp.ne.s32.totalorder %s2396_s26, %s2004_s4  ;;  %p2006_p1 = pneg %p2400_p10 }
  0x84   : > { %s2009_s12 = scalar_lea.hbm %s2658_s1, 128  ;;  %p2010_p11 = scmp.lt.u32.totalorder %s2396_s26, %s2658_s1 }
  0x85   : > { %p2007_p3 = pnand %p2006_p1, %p2005_p8  ;;  %p2011_p6 = scmp.lt.u32.totalorder %s2009_s12, %s2004_s4 }
  0x86   : > { %p2013_p0 = scmp.lt.u32.totalorder %s2004_s4, %s2396_s26 }
  0x87   : > { %p2008_p12 = pneg %p2007_p3  ;;  %p2012_p13 = por %p2011_p6, %p2010_p11 }
  0x89   : > { %p2014_p7 = por %p2013_p0, %p2012_p13 }
  0x8b   : > { %p2015_p5 = pnand %p2014_p7, %p2008_p12 }
  0x8d   : > { %2018 = shalt.err (!%p2015_p5)
}
  0x8e   : > { %s2019_s23 = scalar_lea.vmem %s2404_s10, 64  ;;  %s2134_s0 = smov [#allocation4]  }
  0x8f   : > { %p2020_p8 = scmp.ne.s32.totalorder %s2404_s10, %s2019_s23  ;;  %s2024_s28 = sshll.u32 %s2134_s0, 4  ;;  %s2025_s28 = int_to_ptr.vmem [resolvable:$false] %s2024_s28 }
  0x90   : > { %s2026_s30 = scalar_lea.vmem %s2025_s28, 128  ;;  %p2027_p4 = scmp.lt.s32.totalorder %s2404_s10, %s2025_s28 }
  0x91   : > { %p2022_p3 = pnand %p2020_p8, %p2006_p1  ;;  %p2028_p11 = scmp.lt.s32.totalorder %s2026_s30, %s2019_s23 }
  0x93   : > { %p2023_p9 = pneg %p2022_p3  ;;  %p2029_p6 = por %p2028_p11, %p2027_p4 }
  0x95   : > { %p2030_p13 = pnand %p2029_p6, %p2023_p9 }
  0x97   : > { %2033 = shalt.err (!%p2030_p13)
}
  0x98   : > { %1777 = dma.hbm_to_vmem [thread:$0]  (!%p2400_p10), %s2396_s26, 64, %s2404_s10, %s383_s9  }
  0x99   : > { %p2692_p12 = scmp.ne.s32.totalorder %s2681_s21, 0 }
  0x9a   : > { %s2434_s4 = sand.u32 (!%p2692_p12), 1, %s2108_s14  }
  0x9b   : > { %402 = sbr.rel (%p2692_p12) target bundleno = 2694 (0xa86), region = 60  ;;  %s1562_s12 = sshll.u32 (!%p2692_p12), %s2434_s4, 2 }
  0x9c   : > { %s405_s19 = scalar_lea.sflag (!%p2692_p12), [#allocation5], %s2434_s4  ;;  %s408_s11 = scalar_lea.vmem (!%p2692_p12), [#allocation4], %s1562_s12 }
  0xa2   : > { %2087 = dma.done.wait (%p2375_p2), %s405_s19, 64  }
  0xa3   : > { %2089 = vsyncadd (%p2375_p2), %s405_s19, 4294967232  ;;  %p2693_p4 = scmp.ne.s32.totalorder %s2680_s20, 0 }
  0xa5   : > { %2091 = dma.done.wait (%p2693_p4), [#allocation8], 512  }
  0xa6   : > { %2093 = vsyncadd (%p2693_p4), [#allocation8], 4294966784 }
  0xa7   : > { %2095 = dma.done.wait (%p2693_p4), [#allocation11], 512  }
  0xa8   : > { %2097 = vsyncadd (%p2693_p4), [#allocation11], 4294966784  ;;  %v2135_v0 = vmov 0.0   ;;  %vm2136_vm0 = vmmov 0   ;;  %p468_p2 = scmp.lt.s32.totalorder %s2116_s16, 1  ;;  %v1856_v1 = vld [vmem:[%s2660_s3] sm:$0xff]   ;;  %v488_v10 = vlaneseq }
  0xa9   : > { %1641 = vmatprep.subr.bf16.mxu0 %v2135_v0  ;;  %1645 = vmatprep.mubr.msk.bf16.mxu0 %vm2136_vm0, %v2135_v0  ;;  %v1857_v2 = vld [vmem:[%s2660_s3 + $0x8] sm:$0xff]   ;;  %vm504_vm1 = vcmask 261120   ;;  %v1858_v4 = vld [vmem:[%s2659_s2] sm:$0xff]   ;;  %s2694_s30 = sld [smem:[#allocation18_spill]]  ;;  %v1860_v8 = vld [vmem:[#allocation7] sm:$0xff]   ;;  %vm609_vm2 = vcmask 257024  }
  0xaa   : > { %1649 = vmatprep.subr.bf16.mxu1 %v2135_v0  ;;  %1653 = vmatprep.mubr.msk.bf16.mxu1 %vm2136_vm0, %v2135_v0  ;;  %s469_s21 = scalar_select %p468_p2, %s2116_s16, 1  ;;  %v483_v3 = vld [vmem:[%s408_s11] sm:$0xf]  ;;  %v1861_v9 = vld [vmem:[#allocation7 + $0x8] sm:$0xff]   ;;  %v2492_v11 = vshrl.u32 %v488_v10, 7  ;;  %v2495_v13 = vld [vmem:[#allocation12] sm:$0xff] }
  0xab   : > { %1642 = vmatpush3.bf16.msra.mxu0 %v1856_v1  ;;  %v1859_v5 = vld [vmem:[%s2659_s2 + $0x8] sm:$0xff]   ;;  %1650 = vmatpush3.bf16.msra.mxu1 %v1860_v8  ;;  %vm682_vm3 = vcmask 64512   ;;  %s2137_s11 = smov 112   ;;  %s2139_s26 = smov 104   ;;  %vm744_vm4 = vcmask 1043456   ;;  %vm1138_vm5 = vcmask 130048  }
  0xac   : > { %s1568_s24 = sshll.u32 %s469_s21, 3  ;;  %1643 = vmatprep.subr.bf16.mxu0 %v2135_v0  ;;  %1651 = vmatprep.subr.bf16.mxu1 %v2135_v0  ;;  %v490_v12 = vsub.s32 1, %v2492_v11  ;;  %v621_v21 = vsub.s32 0, %v2492_v11  ;;  %s2138_s21 = smov 120   ;;  %v554_v32 = vsub.s32 2, %v2492_v11  ;;  %vm1140_vm6 = vcmask 195584  }
  0xad   : > { %s2140_s20 = smov 8   ;;  %s2141_s10 = smov 16   ;;  %vm1335_vm7 = vcmask 523264  }
  0xae   : > { %v491_v14 = vrot.slane %v2495_v13, %v490_v12  ;;  %v622_v22 = vrot.slane %v2495_v13, %v621_v21  ;;  %v555_v33 = vrot.slane %v2495_v13, %v554_v32  ;;  %s2695_s0 = sld [smem:[#allocation20_spill]]  ;;  %s1405_s22 = scalar_lea.sflag [#allocation6], %s2434_s4 }
  0xaf   : > { %s474_s12 = scalar_lea.vmem %s2694_s30, %s1568_s24  ;;  %1644 = vmatpush3.bf16.msra.mxu0 %v1857_v2  ;;  %1652 = vmatpush3.bf16.msra.mxu1 %v1861_v9  ;;  %s2142_s24 = smov 24  }
  0xb0   : > { %1657 = vmatprep.subr.bf16.mxu0 %v2135_v0  ;;  %v2475_v6 = vld [vmem:[%s474_s12] sm:$0xff]  ;;  %1665 = vmatprep.subr.bf16.mxu1 %v2135_v0  ;;  %s2697_s12 = sld [smem:[#allocation22_spill]]  ;;  %p2698_p10 = scmp.ne.s32.totalorder %s2689_s25, 0 }
  0xb1   : > { %v614_v7 = vpack.c.bf16 %v2475_v6, %v2475_v6 }
  0xb2   : > { %1646 = vmatmul.mubr.msk.bf16.vlgmr.msra.gmra.mrb[0].mxu0 %vm504_vm1, %v483_v3  ;;  %1654 = vmatmul.mubr.msk.bf16.vlgmr.msra.gmra.mrb[0].mxu1 %vm504_vm1, %v483_v3 }
  0xb3   : > { %1658 = vmatpush3.bf16.msra.mxu0 %v1858_v4  ;;  %1661 = vmatprep.mubr.msk.bf16.mxu0 %vm2136_vm0, %v2135_v0 }
  0xb4   : > { %1659 = vmatprep.subr.bf16.mxu0 %v2135_v0  ;;  %1667 = vmatprep.mubr.msk.bf16.mxu1 %vm2136_vm0, %v2135_v0 }
  0xb7   : > { %1660 = vmatpush3.bf16.msra.mxu0 %v1859_v5 }
  0xb8   : > { %1671 = vmatprep.subr.bf16.mxu0 %v2135_v0 }
  0xba   : > { %1662 = vmatmul.mubr.msk.bf16.vlgmr.msra.gmra.mrb[4].mxu0 %vm504_vm1, %v614_v7 }
  0xbb   : > { %1673 = vmatprep.mubr.msk.bf16.mxu0 %vm2136_vm0, %v2135_v0 }
 0x185   : > { %v542_v15 = vpop.f32.mrb[0].mxu0  ;;  %v602_v34 = vpop.f32.mrb[0].mxu1 }
 0x186   : > { %v543_v16 = vadd.f32 %v542_v15, %v491_v14  ;;  %v1647_v17 = vpop.f32.mrb[1].mxu0  ;;  %v603_v35 = vadd.f32 %v602_v34, %v555_v33  ;;  %v1655_v36 = vpop.f32.mrb[1].mxu1 }
 0x187   : > { %v545_v18 = vpop.f32.mrb[2].mxu0  ;;  %v605_v37 = vpop.f32.mrb[2].mxu1 }
 0x188   : > { %v608_v19 = vpack.c.bf16 %v543_v16, %v543_v16  ;;  %v1648_v20 = vpop.f32.mrb[3].mxu0  ;;  %v611_v38 = vpack.c.bf16 %v603_v35, %v603_v35  ;;  %v1656_v39 = vpop.f32.mrb[3].mxu1 }
 0x18a   : > { %610 = vst.msk [vmem:[#allocation2] sm:$0xf] %vm609_vm2, %v608_v19  ;;  %612 = vst.msk [vmem:[#allocation3] sm:$0xf] %vm609_vm2, %v611_v38 }
 0x18d   : > { %v673_v23 = vpop.f32.mrb[4].mxu0 }
 0x18e   : > { %v1663_v24 = vpop.f32.mrb[5].mxu0  ;;  %v674_v26 = vadd.f32 %v673_v23, %v622_v22 }
 0x18f   : > { %v676_v25 = vpop.f32.mrb[6].mxu0 }
 0x190   : > { %v1664_v27 = vpop.f32.mrb[7].mxu0  ;;  %v681_v31 = vpack.c.bf16 %v674_v26, %v674_v26 }
 0x191   : > { %v679_v28 = vld [vmem:[#allocation2] sm:$0xf]  ;;  %v680_v40 = vld [vmem:[#allocation3] sm:$0xf] }
 0x192   : > { %v687_v29 = vsel %vm682_vm3, %v679_v28, 0  ;;  %v1580_v30 = vcombine.low %v679_v28, %v679_v28  ;;  %v746_v41 = vsel %vm744_vm4, %v680_v40, 0  ;;  %v1582_v16 = vcombine.low %v680_v40, %v680_v40 }
 0x193   : > { %1666 = vmatpush3.bf16.xpose.msra.mxu1 %v687_v29  ;;  %1672 = vmatpush3.bf16.msra.mxu0 %v746_v41 }
 0x194   : > { %907 = vrot.lane.b32.xlu1 %v1580_v30, %s2137_s11  ;;  %794 = vrot.lane.b32.xlu0 %v1580_v30, %s2138_s21 }
 0x195   : > { %1677 = vmatprep.subr.bf16.mxu1 %v2135_v0  ;;  %1683 = vmatprep.subr.bf16.mxu0 %v2135_v0 }
 0x198   : > { %905 = vrot.lane.b32.xlu1 %v681_v31, %s2137_s11  ;;  %789 = vrot.lane.b32.xlu0 %v681_v31, %s2138_s21 }
 0x19a   : > { %1668 = vmatmul.mubr.msk.bf16.vlgmr.msra.gmra.mrb[4].mxu1 %vm682_vm3, %v681_v31 }
 0x19b   : > { %1679 = vmatprep.mubr.msk.bf16.mxu1 %vm2136_vm0, %v2135_v0 }
 0x19c   : > { %1015 = vrot.lane.b32.xlu1 %v681_v31, %s2139_s26  ;;  %1017 = vrot.lane.b32.xlu0 %v1580_v30, %s2139_s26 }
 0x206   : > { %v795_v42 = vpop.permute.xlu0 %794  ;;  %v908_v44 = vpop.permute.xlu1 %907 }
 0x207   : > { %v800_v43 = vsel %vm682_vm3, %v795_v42, 0  ;;  %v913_v46 = vsel %vm682_vm3, %v908_v44, 0 }
 0x208   : > { %1678 = vmatpush3.bf16.xpose.msra.mxu1 %v800_v43 }
 0x209   : > { %1689 = vmatprep.subr.bf16.mxu1 %v2135_v0 }
 0x20a   : > { %v790_v45 = vpop.permute.xlu0 %789  ;;  %v906_v48 = vpop.permute.xlu1 %905 }
 0x20e   : > { %v1018_v47 = vpop.permute.xlu0 %1017  ;;  %v1016_v50 = vpop.permute.xlu1 %1015 }
 0x20f   : > { %1680 = vmatmul.mubr.msk.bf16.vlgmr.msra.gmra.mrb[8].mxu1 %vm682_vm3, %v790_v45  ;;  %v1023_v49 = vsel %vm682_vm3, %v1018_v47, 0 }
 0x210   : > { %1690 = vmatpush3.bf16.xpose.msra.mxu1 %v913_v46  ;;  %1691 = vmatprep.mubr.msk.bf16.mxu1 %vm2136_vm0, %v2135_v0 }
 0x211   : > { %1701 = vmatprep.subr.bf16.mxu1 %v2135_v0 }
 0x217   : > { %1692 = vmatmul.mubr.msk.bf16.vlgmr.msra.gmra.mrb[12].mxu1 %vm682_vm3, %v906_v48 }
 0x218   : > { %1702 = vmatpush3.bf16.xpose.msra.mxu1 %v1023_v49  ;;  %1703 = vmatprep.mubr.msk.bf16.mxu1 %vm2136_vm0, %v2135_v0 }
 0x219   : > { %1713 = vmatprep.subr.bf16.mxu1 %v2135_v0 }
 0x21f   : > { %1704 = vmatmul.mubr.msk.bf16.vlgmr.msra.gmra.mrb[16].mxu1 %vm682_vm3, %v1016_v50 }
 0x220   : > { %1717 = vmatprep.mubr.msk.bf16.mxu1 %vm2136_vm0, %v2135_v0 }
 0x26d   : > { %v723_v51 = vpop.f32.mrb[4].mxu1 }
 0x26e   : > { %v1669_v52 = vpop.f32.mrb[5].mxu1  ;;  %v729_v53 = vsel %vm682_vm3, %v723_v51, -inf }
 0x26f   : > { %730 = vmax.xlane.f32.xlu0 %v729_v53  ;;  %v726_v54 = vpop.f32.mrb[6].mxu1 }
 0x270   : > { %v1670_v55 = vpop.f32.mrb[7].mxu1 }
 0x2e2   : > { %v836_v56 = vpop.f32.mrb[8].mxu1 }
 0x2e3   : > { %v1681_v57 = vpop.f32.mrb[9].mxu1  ;;  %v842_v58 = vsel %vm682_vm3, %v836_v56, -inf }
 0x2e4   : > { %843 = vmax.xlane.f32.xlu1 %v842_v58  ;;  %v839_v59 = vpop.f32.mrb[10].mxu1  ;;  %v1864_v58 = vld [vmem:[#allocation9] sm:$0xff]  }
 0x2e5   : > { %v1682_v60 = vpop.f32.mrb[11].mxu1  ;;  %1714 = vmatpush3.bf16.msra.mxu1 %v1864_v58  ;;  %v1595_v58 = vld [vmem:[#allocation12 + $0x8] ss:$0 sm:$0xff] }
 0x2e6   : > { %1715 = vmatprep.subr.bf16.mxu1 %v2135_v0 }
 0x2ea   : > { %v949_v61 = vpop.f32.mrb[12].mxu1 }
 0x2eb   : > { %v1693_v62 = vpop.f32.mrb[13].mxu1  ;;  %v955_v63 = vsel %vm682_vm3, %v949_v61, -inf }
 0x2ec   : > { %956 = vmax.xlane.f32.xlu0 %v955_v63  ;;  %v952_v1 = vpop.f32.mrb[14].mxu1  ;;  %v1865_v63 = vld [vmem:[#allocation9 + $0x8] sm:$0xff]  }
 0x2ed   : > { %v1694_v2 = vpop.f32.mrb[15].mxu1  ;;  %1716 = vmatpush3.bf16.msra.mxu1 %v1865_v63 }
 0x2ee   : > { %1729 = vmatprep.subr.bf16.mxu1 %v2135_v0 }
 0x2f2   : > { %v1059_v3 = vpop.f32.mrb[16].mxu1 }
 0x2f3   : > { %v1705_v4 = vpop.f32.mrb[17].mxu1  ;;  %v1065_v5 = vsel %vm682_vm3, %v1059_v3, -inf }
 0x2f4   : > { %1066 = vmax.xlane.f32.xlu0 %v1065_v5  ;;  %v1062_v7 = vpop.f32.mrb[18].mxu1 }
 0x2f5   : > { %v1706_v8 = vpop.f32.mrb[19].mxu1 }
 0x2fc   : > { %v731_v9 = vpop.xlane.xlu0 %730 }
 0x2fd   : > { %v732_v10 = vsub.f32 %v723_v51, %v731_v9 }
 0x2ff   : > { %v733_v12 = vmul.f32 1.442695, %v732_v10 }
 0x301   : > { %1872 = vpow2.f32 %v733_v12 }
 0x30b   : > { %v1873_v14 = vpop.eup %1872 }
 0x30c   : > { %v735_v15 = vsel %vm682_vm3, %v1873_v14, 0.0 }
 0x30d   : > { %736 = vadd.xlane.f32.xlu1 %v735_v15 }
 0x31e   : > { %857 = vrot.lane.b32.xlu1 %v1582_v16, %s2138_s21 }
 0x371   : > { %v844_v17 = vpop.xlane.xlu1 %843 }
 0x372   : > { %v845_v18 = vsub.f32 %v836_v56, %v844_v17 }
 0x374   : > { %v846_v19 = vmul.f32 1.442695, %v845_v18 }
 0x376   : > { %1874 = vpow2.f32 %v846_v19  ;;  %v1149_v19 = vsub.s32 3, %v2492_v11 }
 0x379   : > { %v957_v20 = vpop.xlane.xlu0 %956 }
 0x37a   : > { %v958_v21 = vsub.f32 %v949_v61, %v957_v20  ;;  %v1150_v20 = vrot.slane %v2495_v13, %v1149_v19 }
 0x37c   : > { %v959_v22 = vmul.f32 1.442695, %v958_v21 }
 0x37e   : > { %1876 = vpow2.f32 %v959_v22 }
 0x380   : > { %v1875_v23 = vpop.eup %1874 }
 0x381   : > { %v1067_v24 = vpop.xlane.xlu0 %1066  ;;  %v848_v25 = vsel %vm682_vm3, %v1875_v23, 0.0 }
 0x382   : > { %v1068_v26 = vsub.f32 %v1059_v3, %v1067_v24  ;;  %849 = vadd.xlane.f32.xlu0 %v848_v25 }
 0x384   : > { %v1069_v27 = vmul.f32 1.442695, %v1068_v26 }
 0x386   : > { %1878 = vpow2.f32 %v1069_v27 }
 0x388   : > { %v1877_v28 = vpop.eup %1876 }
 0x389   : > { %v961_v29 = vsel %vm682_vm3, %v1877_v28, 0.0 }
 0x38a   : > { %962 = vadd.xlane.f32.xlu1 %v961_v29 }
 0x390   : > { %v1879_v30 = vpop.eup %1878 }
 0x391   : > { %v1071_v31 = vsel %vm682_vm3, %v1879_v30, 0.0 }
 0x392   : > { %1072 = vadd.xlane.f32.xlu0 %v1071_v31 }
 0x39a   : > { %v737_v32 = vpop.xlane.xlu1 %736 }
 0x39b   : > { %1880 = vrcp.f32 %v737_v32  ;;  %1077 = vrot.lane.b32.xlu1 %v1582_v16, %s2139_s26 }
 0x39e   : > { %v858_v35 = vpop.permute.xlu1 %857 }
 0x39f   : > { %v863_v37 = vsel %vm744_vm4, %v858_v35, 0  ;;  %v1869_v35 = vld [vmem:[%s2695_s0 + $0x8] sm:$0xff]  }
 0x3a5   : > { %v1881_v33 = vpop.eup %1880 }
 0x3a6   : > { %v739_v34 = vmul.f32 %v1881_v33, %v1873_v14  ;;  %v1866_v33 = vld [vmem:[#allocation10] sm:$0xff]  }
 0x3a8   : > { %967 = vrot.lane.b32.xlu0 %v1582_v16, %s2137_s11  ;;  %v740_v36 = vpack.c.bf16 %v739_v34, %v739_v34  ;;  %v1867_v34 = vld [vmem:[#allocation10 + $0x8] sm:$0xff]  }
 0x3aa   : > { %1674 = vmatmul.mubr.msk.bf16.vlgmr.msra.gmra.mrb[8].mxu0 %vm682_vm3, %v740_v36 }
 0x3ab   : > { %1684 = vmatpush3.bf16.msra.mxu0 %v863_v37  ;;  %1685 = vmatprep.mubr.msk.bf16.mxu0 %vm2136_vm0, %v2135_v0 }
 0x3ac   : > { %1695 = vmatprep.subr.bf16.mxu0 %v2135_v0 }
 0x40f   : > { %v850_v38 = vpop.xlane.xlu0 %849 }
 0x410   : > { %1882 = vrcp.f32 %v850_v38 }
 0x417   : > { %v963_v39 = vpop.xlane.xlu1 %962 }
 0x418   : > { %1884 = vrcp.f32 %v963_v39  ;;  %v1223_v39 = vsub.s32 4, %v2492_v11 }
 0x41a   : > { %v1883_v40 = vpop.eup %1882 }
 0x41b   : > { %v852_v41 = vmul.f32 %v1883_v40, %v1875_v23  ;;  %v1078_v48 = vpop.permute.xlu1 %1077  ;;  %v1228_v40 = vsub.s32 5, %v2492_v11 }
 0x41c   : > { %v1083_v50 = vsel %vm744_vm4, %v1078_v48, 0  ;;  %v1870_v48 = vld [vmem:[%s2695_s0 + $0x10] sm:$0xff]  }
 0x41d   : > { %v853_v42 = vpack.c.bf16 %v852_v41, %v852_v41  ;;  %v1224_v41 = vrot.slane %v2495_v13, %v1223_v39 }
 0x41f   : > { %1686 = vmatmul.mubr.msk.bf16.vlgmr.msra.gmra.mrb[12].mxu0 %vm682_vm3, %v853_v42  ;;  %v1073_v43 = vpop.xlane.xlu0 %1072 }
 0x420   : > { %1886 = vrcp.f32 %v1073_v43  ;;  %1697 = vmatprep.mubr.msk.bf16.mxu0 %vm2136_vm0, %v2135_v0 }
 0x422   : > { %v1885_v44 = vpop.eup %1884 }
 0x423   : > { %v965_v45 = vmul.f32 %v1885_v44, %v1877_v28  ;;  %v968_v46 = vpop.permute.xlu0 %967  ;;  %v1229_v44 = vrot.slane %v2495_v13, %v1228_v40 }
 0x424   : > { %v973_v47 = vsel %vm744_vm4, %v968_v46, 0 }
 0x425   : > { %1696 = vmatpush3.bf16.msra.mxu0 %v973_v47  ;;  %v966_v49 = vpack.c.bf16 %v965_v45, %v965_v45 }
 0x426   : > { %1707 = vmatprep.subr.bf16.mxu0 %v2135_v0 }
 0x428   : > { %1698 = vmatmul.mubr.msk.bf16.vlgmr.msra.gmra.mrb[16].mxu0 %vm682_vm3, %v966_v49  ;;  %v1871_v49 = vld [vmem:[%s2695_s0 + $0x18] sm:$0xff]  }
 0x429   : > { %1708 = vmatpush3.bf16.msra.mxu0 %v1083_v50  ;;  %1709 = vmatprep.mubr.msk.bf16.mxu0 %vm2136_vm0, %v2135_v0 }
 0x42a   : > { %v1887_v51 = vpop.eup %1886  ;;  %1721 = vmatprep.subr.bf16.mxu0 %v2135_v0 }
 0x42b   : > { %v1075_v52 = vmul.f32 %v1887_v51, %v1879_v30 }
 0x42d   : > { %v1076_v53 = vpack.c.bf16 %v1075_v52, %v1075_v52 }
 0x430   : > { %1710 = vmatmul.mubr.msk.bf16.vlgmr.msra.gmra.mrb[20].mxu0 %vm682_vm3, %v1076_v53 }
 0x431   : > { %1725 = vmatprep.mubr.msk.bf16.mxu0 %vm2136_vm0, %v2135_v0  ;;  %1722 = vmatpush3.bf16.msra.mxu0 %v1866_v33 }
 0x432   : > { %1723 = vmatprep.subr.bf16.mxu0 %v2135_v0 }
 0x435   : > { %1724 = vmatpush3.bf16.msra.mxu0 %v1867_v34 }
 0x47d   : > { %v782_v54 = vpop.f32.mrb[8].mxu0 }
 0x47e   : > { %v1675_v55 = vpop.f32.mrb[9].mxu0 }
 0x47f   : > { %v785_v56 = vpop.f32.mrb[10].mxu0 }
 0x480   : > { %v1676_v57 = vpop.f32.mrb[11].mxu0 }
 0x4f2   : > { %v899_v59 = vpop.f32.mrb[12].mxu0 }
 0x4f3   : > { %1126 = vrot.lane.b32.xlu1 %v899_v59, %s2140_s20  ;;  %v1687_v60 = vpop.f32.mrb[13].mxu0  ;;  %s2696_s20 = sld [smem:[#allocation21_spill]] }
 0x4f4   : > { %v902_v61 = vpop.f32.mrb[14].mxu0 }
 0x4f5   : > { %v1688_v62 = vpop.f32.mrb[15].mxu0 }
 0x4f9   : > { %v1591_v50 = vld [vmem:[%s2696_s20] ss:$0 sm:$0xff] }
 0x4fb   : > { %v1009_v1 = vpop.f32.mrb[16].mxu0 }
 0x4fc   : > { %1130 = vrot.lane.b32.xlu0 %v1009_v1, %s2141_s10  ;;  %v1699_v2 = vpop.f32.mrb[17].mxu0  ;;  %s1567_s10 = sshll.u32 %s2434_s4, 3 }
 0x4fd   : > { %v1012_v3 = vpop.f32.mrb[18].mxu0  ;;  %s467_s9 = scalar_lea.vmem [#allocation13], %s1567_s10 }
 0x4fe   : > { %v1700_v4 = vpop.f32.mrb[19].mxu0  ;;  %s1419_s23 = sshll.u32 %s467_s9, 4  ;;  %s2609_s23 = int_to_ptr.vmem [resolvable:$true] %s1419_s23 }
 0x4ff   : > { %s2034_s11 = scalar_lea.vmem %s2609_s23, 128 }
 0x500   : > { %p2035_p9 = scmp.ne.s32.totalorder %s2609_s23, %s2034_s11 }
 0x502   : > { %p2036_p1 = pnand %p2035_p9, %p2698_p10 }
 0x503   : > { %v1119_v5 = vpop.f32.mrb[20].mxu0 }
 0x504   : > { %1134 = vrot.lane.b32.xlu1 %v1119_v5, %s2142_s24  ;;  %v1711_v7 = vpop.f32.mrb[21].mxu0  ;;  %s1602_s24 = sshll.u32 %s2116_s16, 7  ;;  %p2037_p0 = pneg %p2036_p1 }
 0x505   : > { %v1122_v8 = vpop.f32.mrb[22].mxu0  ;;  %s2607_s19 = scalar_lea.hbm %s2697_s12, %s1602_s24  ;;  %s2143_s16 = smov [#allocation13]  }
 0x506   : > { %v1712_v9 = vpop.f32.mrb[23].mxu0  ;;  %s2038_s21 = sshll.u32 %s2143_s16, 4  ;;  %s2039_s21 = int_to_ptr.vmem [resolvable:$false] %s2038_s21 }
 0x507   : > { %s2040_s26 = scalar_lea.vmem %s2039_s21, 256  ;;  %p2041_p7 = scmp.lt.s32.totalorder %s2609_s23, %s2039_s21 }
 0x508   : > { %p2042_p5 = scmp.lt.s32.totalorder %s2040_s26, %s2034_s11 }
 0x50a   : > { %p2043_p8 = por %p2042_p5, %p2041_p7 }
 0x50c   : > { %p2044_p3 = pnand %p2043_p8, %p2037_p0 }
 0x565   : > { %v1127_v10 = vpop.permute.xlu1 %1126 }
 0x566   : > { %v1137_v14 = vsel %vm682_vm3, %v782_v54, %v1127_v10 }
 0x56e   : > { %v1131_v12 = vpop.permute.xlu0 %1130 }
 0x56f   : > { %v1139_v15 = vsel %vm1138_vm5, %v1137_v14, %v1131_v12  ;;  %v1395_v12 = vsub.s32 6, %v2492_v11  ;;  %v1400_v14 = vsub.s32 7, %v2492_v11 }
 0x576   : > { %v1135_v16 = vpop.permute.xlu1 %1134 }
 0x577   : > { %v1141_v17 = vsel %vm1140_vm6, %v1139_v15, %v1135_v16  ;;  %v1396_v15 = vrot.slane %v2495_v13, %v1395_v12 }
 0x578   : > { %v1142_v18 = vpack.c.bf16 %v1141_v17, %v1141_v17 }
 0x57a   : > { %1718 = vmatmul.mubr.msk.bf16.vlgmr.msra.gmra.mrb[20].mxu1 %vm504_vm1, %v1142_v18  ;;  %v1401_v18 = vrot.slane %v2495_v13, %v1400_v14 }
 0x57b   : > { %1737 = vmatprep.mubr.msk.bf16.mxu1 %vm2136_vm0, %v2135_v0 }
 0x64d   : > { %v1200_v21 = vpop.f32.mrb[20].mxu1 }
 0x64e   : > { %v1201_v22 = vadd.f32 %v1200_v21, %v1150_v20  ;;  %v1719_v23 = vpop.f32.mrb[21].mxu1 }
 0x64f   : > { %v1203_v24 = vpop.f32.mrb[22].mxu1 }
 0x650   : > { %v1720_v25 = vpop.f32.mrb[23].mxu1  ;;  %v1206_v26 = vadd.f32 %v1201_v22, %v2475_v6  ;;  %v1868_v6 = vld [vmem:[%s2695_s0] sm:$0xff]  }
 0x651   : > { %1730 = vmatpush3.bf16.msra.mxu1 %v1868_v6 }
 0x652   : > { %v1207_v27 = vsel %vm504_vm1, %v1206_v26, 0.0  ;;  %1731 = vmatprep.subr.bf16.mxu1 %v2135_v0 }
 0x653   : > { %1208 = vadd.xlane.f32.xlu0 %v1207_v27 }
 0x655   : > { %1732 = vmatpush3.bf16.msra.mxu1 %v1869_v35 }
 0x656   : > { %1733 = vmatprep.subr.bf16.mxu1 %v2135_v0 }
 0x659   : > { %1734 = vmatpush3.bf16.msra.mxu1 %v1870_v48 }
 0x65a   : > { %1735 = vmatprep.subr.bf16.mxu1 %v2135_v0 }
 0x65d   : > { %1736 = vmatpush3.bf16.msra.mxu1 %v1871_v49 }
 0x6e0   : > { %v1209_v28 = vpop.xlane.xlu0 %1208 }
 0x6e1   : > { %v1211_v29 = vmul.f32 0.03125, %v1209_v28 }
 0x6e3   : > { %v1212_v30 = vsub.f32 %v1206_v26, %v1211_v29 }
 0x6e5   : > { %v1213_v31 = vmul.f32 %v1212_v30, %v1212_v30 }
 0x6e7   : > { %v1214_v32 = vsel %vm504_vm1, %v1213_v31, 0.0 }
 0x6e8   : > { %1215 = vadd.xlane.f32.xlu1 %v1214_v32 }
 0x775   : > { %v1216_v36 = vpop.xlane.xlu1 %1215 }
 0x776   : > { %v1217_v37 = vmul.f32 0.03125, %v1216_v36 }
 0x778   : > { %v1218_v38 = vadd.f32 1e-05, %v1217_v37 }
 0x77a   : > { %1888 = vrsqrt.f32 %v1218_v38 }
 0x784   : > { %v1889_v42 = vpop.eup %1888 }
 0x785   : > { %v1220_v43 = vmul.f32 %v1889_v42, %v1212_v30 }
 0x787   : > { %v1225_v45 = vmul.f32 %v1224_v41, %v1220_v43 }
 0x789   : > { %v1230_v46 = vadd.f32 %v1229_v44, %v1225_v45 }
 0x78b   : > { %v1231_v47 = vpack.c.bf16 %v1230_v46, %v1230_v46 }
 0x78d   : > { %1726 = vmatmul.mubr.msk.bf16.vlgmr.msra.gmra.mrb[24].mxu0 %vm504_vm1, %v1231_v47 }
 0x860   : > { %v1291_v51 = vpop.f32.mrb[24].mxu0 }
 0x861   : > { %v1292_v52 = vadd.f32 %v1591_v50, %v1291_v51  ;;  %v1727_v53 = vpop.f32.mrb[25].mxu0 }
 0x862   : > { %v1294_v54 = vpop.f32.mrb[26].mxu0 }
 0x863   : > { %v1297_v55 = vmax.f32 %v1292_v52, 0.0  ;;  %v1728_v56 = vpop.f32.mrb[27].mxu0 }
 0x865   : > { %v1298_v57 = vpack.c.bf16 %v1297_v55, %v1297_v55 }
 0x867   : > { %1738 = vmatmul.mubr.msk.bf16.vlgmr.msra.gmra.mrb[24].mxu1 %vm1335_vm7, %v1298_v57 }
 0x93a   : > { %v1373_v0 = vpop.f32.mrb[24].mxu1 }
 0x93b   : > { %v1374_v59 = vadd.f32 %v1595_v58, %v1373_v0  ;;  %v1739_v60 = vpop.f32.mrb[25].mxu1 }
 0x93c   : > { %v1376_v61 = vpop.f32.mrb[26].mxu1 }
 0x93d   : > { %v1740_v62 = vpop.f32.mrb[27].mxu1  ;;  %v1379_v63 = vadd.f32 %v1374_v59, %v1230_v46 }
 0x93f   : > { %v1380_v1 = vsel %vm504_vm1, %v1379_v63, 0.0 }
 0x940   : > { %1381 = vadd.xlane.f32.xlu0 %v1380_v1 }
 0x9cd   : > { %v1382_v2 = vpop.xlane.xlu0 %1381 }
 0x9ce   : > { %v1383_v3 = vmul.f32 0.03125, %v1382_v2 }
 0x9d0   : > { %v1384_v4 = vsub.f32 %v1379_v63, %v1383_v3 }
 0x9d2   : > { %v1385_v5 = vmul.f32 %v1384_v4, %v1384_v4 }
 0x9d4   : > { %v1386_v7 = vsel %vm504_vm1, %v1385_v5, 0.0 }
 0x9d5   : > { %1387 = vadd.xlane.f32.xlu0 %v1386_v7 }
 0xa62   : > { %v1388_v8 = vpop.xlane.xlu0 %1387 }
 0xa63   : > { %v1389_v9 = vmul.f32 0.03125, %v1388_v8 }
 0xa65   : > { %v1390_v10 = vadd.f32 1e-05, %v1389_v9 }
 0xa67   : > { %1890 = vrsqrt.f32 %v1390_v10 }
 0xa71   : > { %v1891_v16 = vpop.eup %1890 }
 0xa72   : > { %v1392_v17 = vmul.f32 %v1891_v16, %v1384_v4 }
 0xa74   : > { %v1397_v19 = vmul.f32 %v1396_v15, %v1392_v17 }
 0xa76   : > { %v1402_v20 = vadd.f32 %v1401_v18, %v1397_v19 }
 0xa78   : > { %1403 = vst.msk [vmem:[%s467_s9] sm:$0xff] %vm504_vm1, %v1402_v20 }
 0xa79   : > { %2047 = shalt.err (!%p2044_p3)
}
 0xa7a   : > { %s2048_s4 = scalar_lea.hbm %s2607_s19, 128  ;;  %s2052_s24 = scalar_lea.hbm %s2697_s12, 256 }
 0xa7b   : > { %p2049_p11 = scmp.ne.s32.totalorder %s2607_s19, %s2048_s4  ;;  %p2053_p12 = scmp.lt.u32.totalorder %s2607_s19, %s2697_s12 }
 0xa7c   : > { %p2054_p4 = scmp.lt.u32.totalorder %s2052_s24, %s2048_s4  ;;  %p2056_p9 = scmp.lt.u32.totalorder %s2048_s4, %s2607_s19 }
 0xa7d   : > { %p2050_p6 = pnand %p2049_p11, %p2698_p10 }
 0xa7e   : > { %p2055_p2 = por %p2054_p4, %p2053_p12 }
 0xa7f   : > { %p2051_p13 = pneg %p2050_p6 }
 0xa80   : > { %p2057_p1 = por %p2056_p9, %p2055_p2 }
 0xa82   : > { %p2058_p0 = pnand %p2057_p1, %p2051_p13 }
 0xa84   : > { %2061 = shalt.err (!%p2058_p0)
}
 0xa85   : > { %1759 = dma.vmem_to_hbm [thread:$0]  (%p2698_p10), %s2609_s23, 128, %s2607_s19, %s1405_s22  }
 0xa86 PF: > { %s1431_s30 = sand.u32 1, %s2104_s13   ;;  %p2699_p7 = scmp.ne.s32.totalorder %s2690_s29, 0 }
 0xa87   : > { %p2700_p5 = scmp.ge.s32.totalorder %s2124_s18, 2  ;;  %s1432_s11 = scalar_lea.sflag [#allocation6], %s1431_s30 }
 0xa89   : > { %p1779_p8 = pnand %p2700_p5, %p2699_p7 }
 0xa8b   : > { %2099 = dma.done.wait (!%p1779_p8), %s1432_s11, 128  }
 0xa8c   : > { %2101 = vsyncadd (!%p1779_p8), %s1432_s11, 4294967168  ;;  %s28_s18 = sadd.s32 1, %s2124_s18   ;;  %s2701_s13 = smov %s2108_s14 }
 0xa8d   : > { %p25_p3 = scmp.ge.s32.totalorder %s28_s18, 4   ;;  %s2702_s14 = smov %s2112_s15 }
 0xa8e   : > { %s2703_s15 = smov %s2384_s27  ;;  %s2704_s16 = smov %s2120_s17 }
 0xa8f   : > { %s2705_s17 = smov %s2707_s7  ;;  %27 = sbr.rel (!%p25_p3) target bundleno = 14 (0xe), region = 128 }
 0xa96   :  { %1437 = vsyncpa [#allocation5], 1 }
 0xa97   :  { %1439 = vsyncpa [#allocation5 + $0x1], 1 }
 0xa98   :  { %1440 = vsyncpa [#allocation8], 1 }
 0xa99   :  { %1441 = vsyncpa [#allocation11], 1 }
 0xa9a   :  { %1442 = vsyncpa [#allocation6], 1 }
 0xa9b   :  { %1444 = vsyncpa [#allocation6 + $0x1], 1 }

</bundles_post_ra>
